<compile_context>
chip_gen: v7x
topology: tpu7x:2x2x1
jax: 0.10.0
libtpu: 0.0.40
codegen_flags: <defaults>
</compile_context>

<pallas_src>
import jax
import jax.numpy as jnp
from jax import lax
from jax.experimental import pallas as pl
from jax.experimental.pallas import tpu as pltpu

TEMPERATURE = 0.05
EPS = 1e-8          # matches torch.nn.CosineSimilarity default eps
_NEG_INF = -1e30    # mask value for padded columns


def _round_up(x, m):
    return (x + m - 1) // m * m


def _make_simcse_kernel(block, valid_b, temperature, has_col_padding):
    eps_t = float(EPS * temperature)

    def kernel(e1_ref, e2_ref, n2_ref, out_ref, m_s, l_s, n1t_s, diag_s):
        i = pl.program_id(0)          # row tile
        j = pl.program_id(1)          # column tile (online-LSE reduction axis)

        e1 = e1_ref[...]              # (block, D) native dtype (bf16 ok)
        e2 = e2_ref[...]              # (block, D)

        # --- per-row-tile init: running max/sum and (temperature-scaled) row norms ---
        @pl.when(j == 0)
        def _init():
            e1f = e1.astype(jnp.float32)          # norms accumulated in f32
            n1t_s[...] = (
                jnp.sqrt(jnp.sum(e1f * e1f, axis=-1, keepdims=True)) * temperature
            )
            m_s[...] = jnp.full((block, 1), -jnp.inf, jnp.float32)
            l_s[...] = jnp.zeros((block, 1), jnp.float32)
            diag_s[...] = jnp.zeros((block, 1), jnp.float32)

        # --- similarity logits for this (row, col) tile ------------------------------
        # Contract the last dims (q·kᵀ pattern): MXU consumes e2 without a transpose,
        # native-dtype operands, f32 accumulation.
        dots = lax.dot_general(
            e1, e2,
            dimension_numbers=(((1,), (1,)), ((), ())),
            preferred_element_type=jnp.float32,
        )                                                     # (block, block)

        # denom = max(||e1_i||*||e2_j||, eps) * T  ->  EUP approximate reciprocal.
        denom = jnp.maximum(n1t_s[...] * n2_ref[...], eps_t)  # (block,1)*(1,block)
        sim = dots * pl.reciprocal(denom, approx=True)        # == cosine / temperature

        if has_col_padding:
            col = j * block + lax.broadcasted_iota(jnp.int32, (1, block), 1)
            sim = jnp.where(col < valid_b, sim, _NEG_INF)

        # --- online logsumexp over the column axis -----------------------------------
        m_prev = m_s[...]
        m_new = jnp.maximum(m_prev, jnp.max(sim, axis=-1, keepdims=True))
        l_s[...] = l_s[...] * jnp.exp(m_prev - m_new) + jnp.sum(
            jnp.exp(sim - m_new), axis=-1, keepdims=True)
        m_s[...] = m_new

        # --- positive-pair logit: diagonal lives only in block j == i ----------------
        @pl.when(j == i)
        def _diag():
            e1f = e1.astype(jnp.float32)
            e2f = e2.astype(jnp.float32)
            d_dot = jnp.sum(e1f * e2f, axis=-1, keepdims=True)            # <e1_i, e2_i>
            n2c = jnp.sqrt(jnp.sum(e2f * e2f, axis=-1, keepdims=True))    # ||e2_i||
            diag_s[...] = d_dot * pl.reciprocal(
                jnp.maximum(n1t_s[...] * n2c, eps_t), approx=True)

        # --- finalize: per-row cross-entropy = logsumexp - diag ----------------------
        @pl.when(j == pl.num_programs(1) - 1)
        def _fin():
            out_ref[...] = m_s[...] + jnp.log(l_s[...]) - diag_s[...]

    return kernel


def simcse_loss(emb1, emb2, *, temperature=TEMPERATURE, block=128):
    """SimCSE loss: cross-entropy over cosine-similarity logits, labels = arange(B).

    `block` = 128 is layout-minimal; 256 is a good choice for large batches on
    v6e/v7x (the VMEM budget below stays within v7x's 64 MiB either way).
    """
    b, d = emb1.shape
    assert emb2.shape == (b, d)
    assert block % 128 == 0

    b_pad = _round_up(b, block)
    d_pad = _round_up(d, 128)
    if (b_pad, d_pad) != (b, d):
        emb1 = jnp.pad(emb1, ((0, b_pad - b), (0, d_pad - d)))
        emb2 = jnp.pad(emb2, ((0, b_pad - b), (0, d_pad - d)))

    # ||emb2_j|| precomputed lane-major (1, B_pad) so the kernel broadcasts it over
    # sim columns without an in-kernel sublane->lane relayout.
    e2f = emb2.astype(jnp.float32)
    n2_row = jnp.sqrt(jnp.sum(e2f * e2f, axis=-1))[None, :]            # (1, b_pad) f32

    n_tiles = b_pad // block
    kernel = _make_simcse_kernel(block, b, float(temperature), b_pad != b)

    # VMEM budget from the actual tile footprint (double-buffered inputs plus the
    # f32 (block, block) intermediates), capped so it also fits v7x's 64 MiB VMEM.
    itemsize = jnp.dtype(emb1.dtype).itemsize
    need = (2 * 2 * block * d_pad * itemsize       # e1 / e2 tiles, double-buffered
            + 10 * block * block * 4               # dots/denom/sim/exp temporaries
            + 16 * block * 4)                      # scratch + norm/out blocks
    vmem_limit = int(min(max(2 * need, 32 * 1024 * 1024), 64 * 1024 * 1024))

    row_losses = pl.pallas_call(
        kernel,
        out_shape=jax.ShapeDtypeStruct((b_pad, 1), jnp.float32),
        grid=(n_tiles, n_tiles),
        in_specs=[
            pl.BlockSpec((block, d_pad), lambda i, j: (i, 0)),   # emb1 row tile
            pl.BlockSpec((block, d_pad), lambda i, j: (j, 0)),   # emb2 col tile
            pl.BlockSpec((1, block), lambda i, j: (0, j)),       # ||emb2|| (lane-major)
        ],
        out_specs=pl.BlockSpec((block, 1), lambda i, j: (i, 0)),
        scratch_shapes=[
            pltpu.VMEM((block, 1), jnp.float32),   # running max  m_i
            pltpu.VMEM((block, 1), jnp.float32),   # running sum  l_i
            pltpu.VMEM((block, 1), jnp.float32),   # ||e1_i|| * temperature
            pltpu.VMEM((block, 1), jnp.float32),   # diagonal (positive) logit
        ],
        compiler_params=pltpu.CompilerParams(
            dimension_semantics=("parallel", "arbitrary"),
            vmem_limit_bytes=vmem_limit,
        ),
    )(emb1, emb2, n2_row)

    # mean over the real (unpadded) rows only
    return jnp.mean(row_losses[:b, 0])


def simcse_loss_ref(emb1, emb2, temperature=TEMPERATURE):
    # Pure-JAX reference mirroring the PyTorch module.
    e1 = emb1.astype(jnp.float32)
    e2 = emb2.astype(jnp.float32)
    n1 = jnp.linalg.norm(e1, axis=-1, keepdims=True)
    n2 = jnp.linalg.norm(e2, axis=-1, keepdims=True)
    sim = (e1 @ e2.T) / jnp.maximum(n1 * n2.T, EPS) / temperature
    b = e1.shape[0]
    logp = sim - jax.scipy.special.logsumexp(sim, axis=-1, keepdims=True)
    return -jnp.mean(logp[jnp.arange(b), jnp.arange(b)])


if __name__ == "__main__":
    key = jax.random.PRNGKey(0)
    k1, k2, k3, k4 = jax.random.split(key, 4)

    # 1) Original small demo shape (f32): pads to a single (128, 128) tile.
    B, D = 8, 32
    emb1 = jax.random.normal(k1, (B, D), dtype=jnp.float32)
    emb2 = jax.random.normal(k2, (B, D), dtype=jnp.float32)
    loss = simcse_loss(emb1, emb2)
    jax.block_until_ready(loss)
    ref = simcse_loss_ref(emb1, emb2)
    # tolerance slightly loosened for the EUP approximate reciprocal in the denominator
    assert jnp.allclose(loss, ref, rtol=2e-2, atol=2e-2), (loss, ref)

    # 2) Multi-tile path: bf16 embeddings, B not a multiple of 128
    #    (B=200 -> padded to 256, grid (2, 2), padded columns masked, online LSE).
    B2, D2 = 200, 96
    emb1b = jax.random.normal(k3, (B2, D2), dtype=jnp.float32).astype(jnp.bfloat16)
    emb2b = jax.random.normal(k4, (B2, D2), dtype=jnp.float32).astype(jnp.bfloat16)
    loss2 = simcse_loss(emb1b, emb2b)
    jax.block_until_ready(loss2)
    ref2 = simcse_loss_ref(emb1b, emb2b)
    assert jnp.allclose(loss2, ref2, rtol=2e-2, atol=2e-2), (loss2, ref2)

    print("KERNEL_OK")
</pallas_src>

<mosaic_0001>
module attributes {stable_mosaic.version = 11 : i64} {
  func.func @kernel(%arg0: i32, %arg1: i32, %arg2: memref<128x128xf32, #tpu.memory_space<vmem>>, %arg3: memref<128x128xf32, #tpu.memory_space<vmem>>, %arg4: memref<1x128xf32, #tpu.memory_space<vmem>>, %arg5: memref<128x1xf32, #tpu.memory_space<vmem>>, %arg6: memref<128x1xf32, #tpu.memory_space<vmem>>, %arg7: memref<128x1xf32, #tpu.memory_space<vmem>>, %arg8: memref<128x1xf32, #tpu.memory_space<vmem>>, %arg9: memref<128x1xf32, #tpu.memory_space<vmem>>) attributes {dimension_semantics = [#tpu.dimension_semantics<parallel>, #tpu.dimension_semantics<arbitrary>], iteration_bounds = array<i64: 1, 1>, scalar_prefetch = 0 : i64, scratch_operands = 4 : i64, tpu.core_type = #tpu.core_type<tc>, window_params = [{transform_indices = @transform_0, window_bounds = array<i64: 128, 128>}, {transform_indices = @transform_1, window_bounds = array<i64: 128, 128>}, {transform_indices = @transform_2, window_bounds = array<i64: 1, 128>}, {transform_indices = @transform_3, window_bounds = array<i64: 128, 1>}]} {
    %c0 = arith.constant 0 : index
    %c0_0 = arith.constant 0 : index
    %0 = vector.load %arg2[%c0, %c0_0] : memref<128x128xf32, #tpu.memory_space<vmem>>, vector<128x128xf32>
    %c0_1 = arith.constant 0 : index
    %c0_2 = arith.constant 0 : index
    %1 = vector.load %arg3[%c0_1, %c0_2] : memref<128x128xf32, #tpu.memory_space<vmem>>, vector<128x128xf32>
    %c0_i32 = arith.constant 0 : i32
    %2 = arith.cmpi eq, %arg1, %c0_i32 : i32
    %3 = arith.extui %2 : i1 to i32
    %c0_i32_3 = arith.constant 0 : i32
    %4 = arith.cmpi ne, %3, %c0_i32_3 : i32
    scf.if %4 {
      %47 = arith.mulf %0, %0 : vector<128x128xf32>
      %cst_23 = arith.constant dense<0.000000e+00> : vector<128xf32>
      %48 = vector.multi_reduction <add>, %47, %cst_23 [1] : vector<128x128xf32> to vector<128xf32>
      %49 = vector.shape_cast %48 : vector<128xf32> to vector<128x1xf32>
      %50 = math.sqrt %49 : vector<128x1xf32>
      %cst_24 = arith.constant 5.000000e-02 : f32
      %51 = vector.broadcast %cst_24 : f32 to vector<128x1xf32>
      %52 = arith.mulf %50, %51 : vector<128x1xf32>
      %c0_25 = arith.constant 0 : index
      %c0_26 = arith.constant 0 : index
      %53 = vector.load %arg8[%c0_25, %c0_26] : memref<128x1xf32, #tpu.memory_space<vmem>>, vector<128x1xf32>
      tpu.vector_store %arg8[%c0_25, %c0_26], %52 {strides = array<i32>} : memref<128x1xf32, #tpu.memory_space<vmem>>, vector<128x1xf32>,
      %cst_27 = arith.constant 0xFF800000 : f32
      %54 = vector.broadcast %cst_27 : f32 to vector<128x1xf32>
      %c0_28 = arith.constant 0 : index
      %c0_29 = arith.constant 0 : index
      %55 = vector.load %arg6[%c0_28, %c0_29] : memref<128x1xf32, #tpu.memory_space<vmem>>, vector<128x1xf32>
      tpu.vector_store %arg6[%c0_28, %c0_29], %54 {strides = array<i32>} : memref<128x1xf32, #tpu.memory_space<vmem>>, vector<128x1xf32>,
      %cst_30 = arith.constant 0.000000e+00 : f32
      %56 = vector.broadcast %cst_30 : f32 to vector<128x1xf32>
      %c0_31 = arith.constant 0 : index
      %c0_32 = arith.constant 0 : index
      %57 = vector.load %arg7[%c0_31, %c0_32] : memref<128x1xf32, #tpu.memory_space<vmem>>, vector<128x1xf32>
      tpu.vector_store %arg7[%c0_31, %c0_32], %56 {strides = array<i32>} : memref<128x1xf32, #tpu.memory_space<vmem>>, vector<128x1xf32>,
      %cst_33 = arith.constant 0.000000e+00 : f32
      %58 = vector.broadcast %cst_33 : f32 to vector<128x1xf32>
      %c0_34 = arith.constant 0 : index
      %c0_35 = arith.constant 0 : index
      %59 = vector.load %arg9[%c0_34, %c0_35] : memref<128x1xf32, #tpu.memory_space<vmem>>, vector<128x1xf32>
      tpu.vector_store %arg9[%c0_34, %c0_35], %58 {strides = array<i32>} : memref<128x1xf32, #tpu.memory_space<vmem>>, vector<128x1xf32>,
    } else {
    }
    %cst = arith.constant dense<0.000000e+00> : vector<128x128xf32>
    %5 = tpu.matmul %0, %1, %cst {dimension_numbers = #tpu.dot_dimension_numbers<[1], [1], [0], [0], [0, 0, 1, 0], [], []>} : vector<128x128xf32>, vector<128x128xf32>, vector<128x128xf32> -> vector<128x128xf32>
    %c0_4 = arith.constant 0 : index
    %c0_5 = arith.constant 0 : index
    %6 = vector.load %arg8[%c0_4, %c0_5] : memref<128x1xf32, #tpu.memory_space<vmem>>, vector<128x1xf32>
    %c0_6 = arith.constant 0 : index
    %c0_7 = arith.constant 0 : index
    %7 = vector.load %arg4[%c0_6, %c0_7] : memref<1x128xf32, #tpu.memory_space<vmem>>, vector<1x128xf32>
    %8 = vector.broadcast %6 : vector<128x1xf32> to vector<128x128xf32>
    %9 = vector.broadcast %7 : vector<1x128xf32> to vector<128x128xf32>
    %10 = arith.mulf %8, %9 : vector<128x128xf32>
    %cst_8 = arith.constant 5.000000e-10 : f32
    %11 = vector.broadcast %cst_8 : f32 to vector<128x128xf32>
    %12 = arith.maximumf %10, %11 : vector<128x128xf32>
    %13 = tpu.reciprocal %12 {approx = true} : vector<128x128xf32> -> vector<128x128xf32>
    %14 = arith.mulf %5, %13 : vector<128x128xf32>
    %c128_i32 = arith.constant 128 : i32
    %15 = arith.muli %arg1, %c128_i32 : i32
    %16 = tpu.iota {dimensions = array<i32: 1>} : vector<1x128xi32>
    %17 = vector.broadcast %15 : i32 to vector<1x128xi32>
    %18 = arith.addi %17, %16 : vector<1x128xi32>
    %c8_i32 = arith.constant 8 : i32
    %19 = vector.broadcast %c8_i32 : i32 to vector<1x128xi32>
    %20 = arith.cmpi slt, %18, %19 : vector<1x128xi32>
    %cst_9 = arith.constant -1.000000e+30 : f32
    %21 = vector.shape_cast %20 : vector<1x128xi1> to vector<1x128xi1>
    %22 = vector.broadcast %21 : vector<1x128xi1> to vector<128x128xi1>
    %23 = vector.broadcast %cst_9 : f32 to vector<128x128xf32>
    %24 = arith.select %22, %14, %23 : vector<128x128xi1>, vector<128x128xf32>
    %c0_10 = arith.constant 0 : index
    %c0_11 = arith.constant 0 : index
    %25 = vector.load %arg6[%c0_10, %c0_11] : memref<128x1xf32, #tpu.memory_space<vmem>>, vector<128x1xf32>
    %cst_12 = arith.constant dense<0xFF800000> : vector<128xf32>
    %26 = vector.multi_reduction <maximumf>, %24, %cst_12 [1] : vector<128x128xf32> to vector<128xf32>
    %27 = vector.shape_cast %26 : vector<128xf32> to vector<128x1xf32>
    %28 = arith.maximumf %25, %27 : vector<128x1xf32>
    %c0_13 = arith.constant 0 : index
    %c0_14 = arith.constant 0 : index
    %29 = vector.load %arg7[%c0_13, %c0_14] : memref<128x1xf32, #tpu.memory_space<vmem>>, vector<128x1xf32>
    %30 = arith.subf %25, %28 : vector<128x1xf32>
    %31 = math.exp %30 : vector<128x1xf32>
    %32 = arith.mulf %29, %31 : vector<128x1xf32>
    %33 = vector.broadcast %28 : vector<128x1xf32> to vector<128x128xf32>
    %34 = arith.subf %24, %33 : vector<128x128xf32>
    %35 = math.exp %34 : vector<128x128xf32>
    %cst_15 = arith.constant dense<0.000000e+00> : vector<128xf32>
    %36 = vector.multi_reduction <add>, %35, %cst_15 [1] : vector<128x128xf32> to vector<128xf32>
    %37 = vector.shape_cast %36 : vector<128xf32> to vector<128x1xf32>
    %38 = arith.addf %32, %37 : vector<128x1xf32>
    %c0_16 = arith.constant 0 : index
    %c0_17 = arith.constant 0 : index
    %39 = vector.load %arg7[%c0_16, %c0_17] : memref<128x1xf32, #tpu.memory_space<vmem>>, vector<128x1xf32>
    tpu.vector_store %arg7[%c0_16, %c0_17], %38 {strides = array<i32>} : memref<128x1xf32, #tpu.memory_space<vmem>>, vector<128x1xf32>,
    %c0_18 = arith.constant 0 : index
    %c0_19 = arith.constant 0 : index
    %40 = vector.load %arg6[%c0_18, %c0_19] : memref<128x1xf32, #tpu.memory_space<vmem>>, vector<128x1xf32>
    tpu.vector_store %arg6[%c0_18, %c0_19], %28 {strides = array<i32>} : memref<128x1xf32, #tpu.memory_space<vmem>>, vector<128x1xf32>,
    %41 = arith.cmpi eq, %arg1, %arg0 : i32
    %42 = arith.extui %41 : i1 to i32
    %c0_i32_20 = arith.constant 0 : i32
    %43 = arith.cmpi ne, %42, %c0_i32_20 : i32
    scf.if %43 {
      %47 = arith.mulf %0, %1 : vector<128x128xf32>
      %cst_23 = arith.constant dense<0.000000e+00> : vector<128xf32>
      %48 = vector.multi_reduction <add>, %47, %cst_23 [1] : vector<128x128xf32> to vector<128xf32>
      %49 = vector.shape_cast %48 : vector<128xf32> to vector<128x1xf32>
      %50 = arith.mulf %1, %1 : vector<128x128xf32>
      %cst_24 = arith.constant dense<0.000000e+00> : vector<128xf32>
      %51 = vector.multi_reduction <add>, %50, %cst_24 [1] : vector<128x128xf32> to vector<128xf32>
      %52 = vector.shape_cast %51 : vector<128xf32> to vector<128x1xf32>
      %53 = math.sqrt %52 : vector<128x1xf32>
      %c0_25 = arith.constant 0 : index
      %c0_26 = arith.constant 0 : index
      %54 = vector.load %arg8[%c0_25, %c0_26] : memref<128x1xf32, #tpu.memory_space<vmem>>, vector<128x1xf32>
      %55 = arith.mulf %54, %53 : vector<128x1xf32>
      %cst_27 = arith.constant 5.000000e-10 : f32
      %56 = vector.broadcast %cst_27 : f32 to vector<128x1xf32>
      %57 = arith.maximumf %55, %56 : vector<128x1xf32>
      %58 = tpu.reciprocal %57 {approx = true} : vector<128x1xf32> -> vector<128x1xf32>
      %59 = arith.mulf %49, %58 : vector<128x1xf32>
      %c0_28 = arith.constant 0 : index
      %c0_29 = arith.constant 0 : index
      %60 = vector.load %arg9[%c0_28, %c0_29] : memref<128x1xf32, #tpu.memory_space<vmem>>, vector<128x1xf32>
      tpu.vector_store %arg9[%c0_28, %c0_29], %59 {strides = array<i32>} : memref<128x1xf32, #tpu.memory_space<vmem>>, vector<128x1xf32>,
    } else {
    }
    %c0_i32_21 = arith.constant 0 : i32
    %44 = arith.cmpi eq, %arg1, %c0_i32_21 : i32
    %45 = arith.extui %44 : i1 to i32
    %c0_i32_22 = arith.constant 0 : i32
    %46 = arith.cmpi ne, %45, %c0_i32_22 : i32
    scf.if %46 {
      %c0_23 = arith.constant 0 : index
      %c0_24 = arith.constant 0 : index
      %47 = vector.load %arg6[%c0_23, %c0_24] : memref<128x1xf32, #tpu.memory_space<vmem>>, vector<128x1xf32>
      %c0_25 = arith.constant 0 : index
      %c0_26 = arith.constant 0 : index
      %48 = vector.load %arg7[%c0_25, %c0_26] : memref<128x1xf32, #tpu.memory_space<vmem>>, vector<128x1xf32>
      %49 = math.log %48 : vector<128x1xf32>
      %50 = arith.addf %47, %49 : vector<128x1xf32>
      %c0_27 = arith.constant 0 : index
      %c0_28 = arith.constant 0 : index
      %51 = vector.load %arg9[%c0_27, %c0_28] : memref<128x1xf32, #tpu.memory_space<vmem>>, vector<128x1xf32>
      %52 = arith.subf %50, %51 : vector<128x1xf32>
      %c0_29 = arith.constant 0 : index
      %c0_30 = arith.constant 0 : index
      %53 = vector.load %arg5[%c0_29, %c0_30] : memref<128x1xf32, #tpu.memory_space<vmem>>, vector<128x1xf32>
      tpu.vector_store %arg5[%c0_29, %c0_30], %52 {strides = array<i32>} : memref<128x1xf32, #tpu.memory_space<vmem>>, vector<128x1xf32>,
    } else {
    }
    return
  }
  func.func @transform_0(%arg0: i32, %arg1: i32) -> (i32, i32) {
    %c0_i32 = arith.constant 0 : i32
    %c0_i32_0 = arith.constant 0 : i32
    return %arg0, %c0_i32 : i32, i32
  }
  func.func @transform_1(%arg0: i32, %arg1: i32) -> (i32, i32) {
    %c0_i32 = arith.constant 0 : i32
    %c0_i32_0 = arith.constant 0 : i32
    return %arg1, %c0_i32 : i32, i32
  }
  func.func @transform_2(%arg0: i32, %arg1: i32) -> (i32, i32) {
    %c0_i32 = arith.constant 0 : i32
    %c0_i32_0 = arith.constant 0 : i32
    return %c0_i32, %arg1 : i32, i32
  }
  func.func @transform_3(%arg0: i32, %arg1: i32) -> (i32, i32) {
    %c0_i32 = arith.constant 0 : i32
    %c0_i32_0 = arith.constant 0 : i32
    return %arg0, %c0_i32 : i32, i32
  }
}

</mosaic_0001>

<bundles_post_ra>
// kernel: tpu_custom_call.1
= control target key start
LH: loop header
LB: loop body
LE: loop exit
PB: predicated region body
PF: predicated region fallthrough
CT: control target
= control target key end

     0   :  { %8 = vsyncpa [#allocation7], 0  ;;  %s2939_s0 = inlined_call_operand.hbm [shape: f32[128,128], index: 0, kind: input, shape index: {}]   ;;  %s2940_s1 = inlined_call_operand.hbm [shape: f32[128,128], index: 1, kind: input, shape index: {}]   ;;  %s2941_s2 = inlined_call_operand.vmem [shape: f32[1,128], index: 2, kind: input, shape index: {}]   ;;  %s2942_s3 = inlined_call_operand.vmem [shape: f32[128,1], index: 3, kind: output, shape index: {}]  }
   0x1   :  { %9 = vsyncpa [#allocation9], 0  ;;  %s1903_s12 = smov [#allocation6]   ;;  %s1855_s16 = scalar_lea.hbm %s2939_s0, 2048 }
   0x2   :  { %s15_s13 = sshll.u32 %s1903_s12, 4  ;;  %p1856_p0 = scmp.ne.s32.totalorder %s2939_s0, %s1855_s16  ;;  %s16_s13 = int_to_ptr.vmem [resolvable:$true] %s15_s13 }
   0x3   :  { %p1859_p1 = scmp.lt.u32.totalorder %s1855_s16, %s2939_s0 }
   0x5   :  { %p1861_p2 = pnand %p1859_p1, %p1856_p0 }
   0x7   :  { %1864 = shalt.err (!%p1861_p2)
}
   0x8   :  { %s1865_s21 = scalar_lea.vmem %s16_s13, 2048  ;;  %p1870_p4 = scmp.lt.s32.totalorder %s16_s13, %s16_s13 }
   0x9   :  { %p1866_p3 = scmp.ne.s32.totalorder %s16_s13, %s1865_s21  ;;  %p1871_p5 = scmp.lt.s32.totalorder %s1865_s21, %s1865_s21 }
   0xb   :  { %p1872_p6 = por %p1871_p5, %p1870_p4 }
   0xd   :  { %p1873_p7 = pnand %p1872_p6, %p1866_p3 }
   0xf   :  { %1876 = shalt.err (!%p1873_p7)
}
  0x10   :  { %s1904_s22 = smov 128   ;;  %s1905_s23 = smov 8  }
  0x11   :  { %21 = dma.hbm_to_vmem [thread:$0]  %s2939_s0, 2048, %s16_s13, [#allocation7], %s1904_s22, %s1904_s22, %s1905_s23  }
  0x12   :  { %s1906_s26 = smov [#allocation8]   ;;  %s1877_s30 = scalar_lea.hbm %s2940_s1, 2048 }
  0x13   :  { %s27_s27 = sshll.u32 %s1906_s26, 4  ;;  %p1878_p8 = scmp.ne.s32.totalorder %s2940_s1, %s1877_s30  ;;  %s28_s27 = int_to_ptr.vmem [resolvable:$true] %s27_s27 }
  0x14   :  { %p1881_p9 = scmp.lt.u32.totalorder %s1877_s30, %s2940_s1 }
  0x16   :  { %p1883_p10 = pnand %p1881_p9, %p1878_p8 }
  0x18   :  { %1886 = shalt.err (!%p1883_p10)
}
  0x19   :  { %s1887_s8 = scalar_lea.vmem %s28_s27, 2048  ;;  %p1892_p12 = scmp.lt.s32.totalorder %s28_s27, %s28_s27 }
  0x1a   :  { %p1888_p11 = scmp.ne.s32.totalorder %s28_s27, %s1887_s8  ;;  %p1893_p13 = scmp.lt.s32.totalorder %s1887_s8, %s1887_s8 }
  0x1c   :  { %p1894_p0 = por %p1893_p13, %p1892_p12 }
  0x1e   :  { %p1895_p1 = pnand %p1894_p0, %p1888_p11 }
  0x20   :  { %1898 = shalt.err (!%p1895_p1)
}
  0x21   :  { %33 = dma.hbm_to_vmem [thread:$0]  %s2940_s1, 2048, %s28_s27, [#allocation9], %s1904_s22, %s1904_s22, %s1905_s23  }
  0x22   :  { %1899 = dma.done.wait [#allocation7], 2048  }
  0x23   :  { %1900 = vsyncadd [#allocation7], 4294965248 }
  0x24   :  { %1901 = dma.done.wait [#allocation9], 2048  }
  0x25   :  { %1902 = vsyncadd [#allocation9], 4294965248  ;;  %v1954_v0 = vld [vmem:[#allocation6 + $0x10] sm:$0xff]  ;;  %v42_v1 = vld [vmem:[#allocation6] sm:$0xff]  ;;  %v1907_v52 = vmov 0   ;;  %vm254_vm0 = vcmask 7168  }
  0x26   :  { %v1956_v2 = vld [vmem:[#allocation6 + $0x18] sm:$0xff]  ;;  %v80_v3 = vmul.f32 %v1954_v0, %v1954_v0  ;;  %v78_v4 = vmul.f32 %v42_v1, %v42_v1  ;;  %v1960_v5 = vld [vmem:[#allocation6 + $0x8] sm:$0xff]  ;;  %1518 = vmatprep.mubr.f32.mxu0 %v42_v1  ;;  %v50_v8 = vld [vmem:[#allocation6 + $0x40] sm:$0xff]  ;;  %1597 = vset.pattern.permute.xlu0 %v1907_v52 }
  0x27   :  { %v81_v6 = vmul.f32 %v1956_v2, %v1956_v2  ;;  %v79_v7 = vmul.f32 %v1960_v5, %v1960_v5  ;;  %v1966_v9 = vld [vmem:[#allocation6 + $0x28] sm:$0xff]  ;;  %v1968_v10 = vld [vmem:[#allocation6 + $0x20] sm:$0xff]  ;;  %1530 = vmatprep.mubr.f32.mxu1 %v50_v8  ;;  %v1976_v14 = vld [vmem:[#allocation8 + $0x10] sm:$0xff]  ;;  %v86_v28 = vmul.f32 %v50_v8, %v50_v8  ;;  %1598 = vset.pattern.permute.xlu1 %v1907_v52 }
  0x28   :  { %98 = vadd.xlane.f32.xlu1 %v80_v3  ;;  %94 = vadd.xlane.f32.xlu0 %v78_v4  ;;  %v1970_v11 = vld [vmem:[#allocation8] sm:$0xff]  ;;  %v1972_v12 = vld [vmem:[#allocation8 + $0x8] sm:$0xff]  ;;  %v61_v15 = vld [vmem:[#allocation8 + $0x18] sm:$0xff]  ;;  %v83_v16 = vmul.f32 %v1966_v9, %v1966_v9  ;;  %v82_v17 = vmul.f32 %v1968_v10, %v1968_v10 }
  0x29   :  { %v1542_v13 = vpack.c.bf16 %v1972_v12, %v1970_v11  ;;  %v1546_v18 = vpack.c.bf16 %v61_v15, %v1976_v14  ;;  %v1983_v19 = vld [vmem:[#allocation6 + $0x38] sm:$0xff]  ;;  %v1985_v20 = vld [vmem:[#allocation6 + $0x30] sm:$0xff]  ;;  %v1991_v23 = vld [vmem:[#allocation8 + $0x20] sm:$0xff] }
  0x2a   :  { %v85_v21 = vmul.f32 %v1983_v19, %v1983_v19  ;;  %v84_v22 = vmul.f32 %v1985_v20, %v1985_v20  ;;  %v1993_v24 = vld [vmem:[#allocation8 + $0x28] sm:$0xff]  ;;  %v2001_v29 = vld [vmem:[#allocation6 + $0x58] sm:$0xff]  ;;  %v2003_v30 = vld [vmem:[#allocation6 + $0x50] sm:$0xff] }
  0x2b   :  { %1543 = vmatprep.subr.bf16.mxu0 %v1542_v13  ;;  %1574 = vmatprep.subr.bf16.mxu1 %v1542_v13  ;;  %v1995_v25 = vld [vmem:[#allocation6 + $0x48] sm:$0xff]  ;;  %v1550_v26 = vpack.c.bf16 %v1993_v24, %v1991_v23  ;;  %v89_v31 = vmul.f32 %v2001_v29, %v2001_v29  ;;  %v88_v32 = vmul.f32 %v2003_v30, %v2003_v30  ;;  %v2009_v33 = vld [vmem:[#allocation8 + $0x30] sm:$0xff]  ;;  %v65_v34 = vld [vmem:[#allocation8 + $0x38] sm:$0xff] }
  0x2c   :  { %100 = vadd.xlane.f32.xlu1 %v81_v6  ;;  %96 = vadd.xlane.f32.xlu0 %v79_v7  ;;  %v87_v27 = vmul.f32 %v1995_v25, %v1995_v25  ;;  %v55_v35 = vld [vmem:[#allocation6 + $0x68] sm:$0xff]  ;;  %v54_v36 = vld [vmem:[#allocation6 + $0x60] sm:$0xff]  ;;  %v1554_v37 = vpack.c.bf16 %v65_v34, %v2009_v33  ;;  %v57_v40 = vld [vmem:[#allocation6 + $0x78] sm:$0xff] }
  0x2d   :  { %1545 = vmatpush3.bf16.xpose.msra.mxu0 %v1542_v13  ;;  %1582 = vmatpush3.bf16.xpose.msra.mxu1 %v1542_v13  ;;  %v91_v38 = vmul.f32 %v55_v35, %v55_v35  ;;  %v90_v39 = vmul.f32 %v54_v36, %v54_v36  ;;  %v56_v41 = vld [vmem:[#allocation6 + $0x70] sm:$0xff]  ;;  %v93_v42 = vmul.f32 %v57_v40, %v57_v40  ;;  %v2012_v44 = vld [vmem:[#allocation8 + $0x40] sm:$0xff]  ;;  %v67_v45 = vld [vmem:[#allocation8 + $0x48] sm:$0xff] }
  0x2e   :  { %1547 = vmatprep.subr.bf16.mxu0 %v1546_v18  ;;  %1575 = vmatprep.subr.bf16.mxu1 %v1546_v18  ;;  %v92_v43 = vmul.f32 %v56_v41, %v56_v41  ;;  %v1558_v46 = vpack.c.bf16 %v67_v45, %v2012_v44  ;;  %v2015_v47 = vld [vmem:[#allocation8 + $0x50] sm:$0xff]  ;;  %v69_v48 = vld [vmem:[#allocation8 + $0x58] sm:$0xff]  ;;  %v2018_v50 = vld [vmem:[#allocation8 + $0x60] sm:$0xff] }
  0x2f   :  { %v1562_v49 = vpack.c.bf16 %v69_v48, %v2015_v47  ;;  %v71_v51 = vld [vmem:[#allocation8 + $0x68] sm:$0xff]  ;;  %v2021_v54 = vld [vmem:[#allocation8 + $0x70] sm:$0xff]  ;;  %v73_v55 = vld [vmem:[#allocation8 + $0x78] sm:$0xff] }
  0x30   :  { %104 = vadd.xlane.f32.xlu1 %v83_v16  ;;  %102 = vadd.xlane.f32.xlu0 %v82_v17  ;;  %v1566_v53 = vpack.c.bf16 %v71_v51, %v2018_v50  ;;  %v1570_v56 = vpack.c.bf16 %v73_v55, %v2021_v54 }
  0x34   :  { %108 = vadd.xlane.f32.xlu1 %v85_v21  ;;  %106 = vadd.xlane.f32.xlu0 %v84_v22 }
  0x35   :  { %1549 = vmatpush3.bf16.xpose.msra.mxu0 %v1546_v18  ;;  %1583 = vmatpush3.bf16.xpose.msra.mxu1 %v1546_v18 }
  0x36   :  { %1551 = vmatprep.subr.bf16.mxu0 %v1550_v26  ;;  %1576 = vmatprep.subr.bf16.mxu1 %v1550_v26 }
  0x38   :  { %112 = vadd.xlane.f32.xlu1 %v87_v27  ;;  %110 = vadd.xlane.f32.xlu0 %v86_v28 }
  0x3c   :  { %116 = vadd.xlane.f32.xlu1 %v89_v31  ;;  %114 = vadd.xlane.f32.xlu0 %v88_v32 }
  0x3d   :  { %1553 = vmatpush3.bf16.xpose.msra.mxu0 %v1550_v26  ;;  %1584 = vmatpush3.bf16.xpose.msra.mxu1 %v1550_v26 }
  0x3e   :  { %1555 = vmatprep.subr.bf16.mxu0 %v1554_v37  ;;  %1577 = vmatprep.subr.bf16.mxu1 %v1554_v37 }
  0x40   :  { %120 = vadd.xlane.f32.xlu1 %v91_v38  ;;  %118 = vadd.xlane.f32.xlu0 %v90_v39 }
  0x44   :  { %124 = vadd.xlane.f32.xlu1 %v93_v42  ;;  %122 = vadd.xlane.f32.xlu0 %v92_v43 }
  0x45   :  { %1557 = vmatpush3.bf16.xpose.msra.mxu0 %v1554_v37  ;;  %1585 = vmatpush3.bf16.xpose.msra.mxu1 %v1554_v37 }
  0x46   :  { %1559 = vmatprep.subr.bf16.mxu0 %v1558_v46  ;;  %1578 = vmatprep.subr.bf16.mxu1 %v1558_v46 }
  0x4d   :  { %1561 = vmatpush3.bf16.xpose.msra.mxu0 %v1558_v46  ;;  %1586 = vmatpush3.bf16.xpose.msra.mxu1 %v1558_v46 }
  0x4e   :  { %1563 = vmatprep.subr.bf16.mxu0 %v1562_v49  ;;  %1579 = vmatprep.subr.bf16.mxu1 %v1562_v49 }
  0x55   :  { %1565 = vmatpush3.bf16.xpose.msra.mxu0 %v1562_v49  ;;  %1587 = vmatpush3.bf16.xpose.msra.mxu1 %v1562_v49 }
  0x56   :  { %1567 = vmatprep.subr.bf16.mxu0 %v1566_v53  ;;  %1580 = vmatprep.subr.bf16.mxu1 %v1566_v53 }
  0x5d   :  { %1569 = vmatpush3.bf16.xpose.msra.mxu0 %v1566_v53  ;;  %1588 = vmatpush3.bf16.xpose.msra.mxu1 %v1566_v53 }
  0x5e   :  { %1571 = vmatprep.subr.bf16.mxu0 %v1570_v56  ;;  %1581 = vmatprep.subr.bf16.mxu1 %v1570_v56 }
  0x65   :  { %1573 = vmatpush3.bf16.xpose.msra.mxu0 %v1570_v56  ;;  %1589 = vmatpush3.bf16.xpose.msra.mxu1 %v1570_v56 }
  0x6c   :  { %1519 = vmatmul.mubr.f32.vlgmr.msra.gmra.mrb[0].mxu0 %v1960_v5  ;;  %1531 = vmatmul.mubr.f32.vlgmr.msra.gmra.mrb[0].mxu1 %v1995_v25 }
  0x6d   :  { %1521 = vmatprep.mubr.f32.mxu0 %v1954_v0  ;;  %1533 = vmatprep.mubr.f32.mxu1 %v2003_v30 }
  0x70   :  { %1522 = vmatmul.mubr.f32.gmra.mrb[2].mxu0 %v1956_v2  ;;  %1534 = vmatmul.mubr.f32.gmra.mrb[2].mxu1 %v2001_v29 }
  0x71   :  { %1524 = vmatprep.mubr.f32.mxu0 %v1968_v10  ;;  %1536 = vmatprep.mubr.f32.mxu1 %v54_v36 }
  0x74   :  { %1525 = vmatmul.mubr.f32.gmra.mrb[4].mxu0 %v1966_v9  ;;  %1537 = vmatmul.mubr.f32.gmra.mrb[4].mxu1 %v55_v35 }
  0x75   :  { %1527 = vmatprep.mubr.f32.mxu0 %v1985_v20  ;;  %1539 = vmatprep.mubr.f32.mxu1 %v56_v41 }
  0x78   :  { %1528 = vmatmul.mubr.f32.gmra.mrb[6].mxu0 %v1983_v19  ;;  %1540 = vmatmul.mubr.f32.gmra.mrb[6].mxu1 %v57_v40 }
  0xb5   :  { %v99_v57 = vpop.xlane.xlu1 %98  ;;  %v95_v58 = vpop.xlane.xlu0 %94 }
  0xb6   :  { %1599 = vrsqrt.f32 %v99_v57  ;;  %vm142_vm1 = vcmp.eq.f32.partialorder %v99_v57, inf  ;;  %vm144_vm2 = vcmp.eq.f32.partialorder %v99_v57, 0.0  ;;  %v145_v2 = vand.u32 2147483648, %v99_v57 }
  0xb7   :  { %1601 = vrsqrt.f32 %v95_v58  ;;  %vm128_vm3 = vcmp.eq.f32.partialorder %v95_v58, inf  ;;  %vm130_vm4 = vcmp.eq.f32.partialorder %v95_v58, 0.0  ;;  %v131_v6 = vand.u32 2147483648, %v95_v58 }
  0xb9   :  { %v101_v59 = vpop.xlane.xlu1 %100  ;;  %v97_v60 = vpop.xlane.xlu0 %96 }
  0xba   :  { %1603 = vrsqrt.f32 %v101_v59  ;;  %vm149_vm5 = vcmp.eq.f32.partialorder %v101_v59, inf  ;;  %vm151_vm6 = vcmp.eq.f32.partialorder %v101_v59, 0.0  ;;  %v152_v13 = vand.u32 2147483648, %v101_v59 }
  0xbb   :  { %1605 = vrsqrt.f32 %v97_v60  ;;  %vm135_vm7 = vcmp.eq.f32.partialorder %v97_v60, inf  ;;  %vm137_vm8 = vcmp.eq.f32.partialorder %v97_v60, 0.0  ;;  %v138_v25 = vand.u32 2147483648, %v97_v60 }
  0xbd   :  { %v2034_v61 = vpop.xlane.xlu1 %104  ;;  %v2036_v62 = vpop.xlane.xlu0 %102 }
  0xbe   :  { %1607 = vrsqrt.f32 %v2034_v61  ;;  %vm163_vm9 = vcmp.eq.f32.partialorder %v2034_v61, inf  ;;  %vm165_vm10 = vcmp.eq.f32.partialorder %v2034_v61, 0.0  ;;  %v166_v30 = vand.u32 2147483648, %v2034_v61 }
  0xbf   :  { %1609 = vrsqrt.f32 %v2036_v62  ;;  %vm156_vm11 = vcmp.eq.f32.partialorder %v2036_v62, inf  ;;  %vm158_vm12 = vcmp.eq.f32.partialorder %v2036_v62, 0.0  ;;  %v159_v40 = vand.u32 2147483648, %v2036_v62 }
  0xc0   :  { %v1600_v63 = vpop.eup %1599 }
  0xc1   :  { %v1602_v0 = vpop.eup %1601  ;;  %v141_v1 = vmul.f32 %v1600_v63, %v99_v57  ;;  %v2040_v3 = vpop.xlane.xlu1 %108 }
  0xc2   :  { %v2042_v4 = vpop.xlane.xlu0 %106  ;;  %v127_v5 = vmul.f32 %v1602_v0, %v95_v58  ;;  %1611 = vrsqrt.f32 %v2040_v3  ;;  %vm177_vm13 = vcmp.eq.f32.partialorder %v2040_v3, inf  ;;  %vm179_vm14 = vcmp.eq.f32.partialorder %v2040_v3, 0.0 }
  0xc3   :  { %v143_v7 = vsel %vm142_vm1, %v99_v57, %v141_v1  ;;  %1613 = vrsqrt.f32 %v2042_v4  ;;  %v180_v46 = vand.u32 2147483648, %v2040_v3  ;;  %vm170_vm15 = vcmp.eq.f32.partialorder %v2042_v4, inf }
  0xc4   :  { %v1604_v8 = vpop.eup %1603  ;;  %v146_v9 = vsel %vm144_vm2, %v145_v2, %v143_v7  ;;  %v129_v10 = vsel %vm128_vm3, %v95_v58, %v127_v5  ;;  %v173_v53 = vand.u32 2147483648, %v2042_v4  ;;  %vm172_vm1 = vcmp.eq.f32.partialorder %v2042_v4, 0.0 }
  0xc5   :  { %v1606_v15 = vpop.eup %1605  ;;  %v240_v16 = vmul.f32 0.05, %v146_v9  ;;  %v132_v17 = vsel %vm130_vm4, %v131_v6, %v129_v10  ;;  %v148_v18 = vmul.f32 %v1604_v8, %v101_v59  ;;  %v2046_v19 = vpop.xlane.xlu1 %112 }
  0xc6   :  { %v2048_v20 = vpop.xlane.xlu0 %110  ;;  %v238_v21 = vmul.f32 0.05, %v132_v17  ;;  %v134_v22 = vmul.f32 %v1606_v15, %v97_v60  ;;  %1615 = vrsqrt.f32 %v2046_v19  ;;  %vm191_vm2 = vcmp.eq.f32.partialorder %v2046_v19, inf }
  0xc7   :  { %257 = vst.msk [vmem:[#allocation4 + $0x10] sm:$0xff] %vm254_vm0, %v240_v16  ;;  %v150_v26 = vsel %vm149_vm5, %v101_v59, %v148_v18  ;;  %1617 = vrsqrt.f32 %v2048_v20  ;;  %vm193_vm3 = vcmp.eq.f32.partialorder %v2046_v19, 0.0  ;;  %v194_v0 = vand.u32 2147483648, %v2046_v19 }
  0xc8   :  { %v1608_v27 = vpop.eup %1607  ;;  %255 = vst.msk [vmem:[#allocation4] sm:$0xff] %vm254_vm0, %v238_v21  ;;  %v153_v28 = vsel %vm151_vm6, %v152_v13, %v150_v26  ;;  %v136_v29 = vsel %vm135_vm7, %v97_v60, %v134_v22  ;;  %vm184_vm4 = vcmp.eq.f32.partialorder %v2048_v20, inf  ;;  %vm186_vm5 = vcmp.eq.f32.partialorder %v2048_v20, 0.0 }
  0xc9   :  { %v1610_v31 = vpop.eup %1609  ;;  %v241_v32 = vmul.f32 0.05, %v153_v28  ;;  %v139_v34 = vsel %vm137_vm8, %v138_v25, %v136_v29  ;;  %v162_v35 = vmul.f32 %v1608_v27, %v2034_v61  ;;  %v2064_v36 = vpop.xlane.xlu1 %116 }
  0xca   :  { %v2066_v37 = vpop.xlane.xlu0 %114  ;;  %v239_v38 = vmul.f32 0.05, %v139_v34  ;;  %v155_v39 = vmul.f32 %v1610_v31, %v2036_v62  ;;  %1619 = vrsqrt.f32 %v2064_v36  ;;  %vm205_vm6 = vcmp.eq.f32.partialorder %v2064_v36, inf }
  0xcb   :  { %258 = vst.msk [vmem:[#allocation4 + $0x18] sm:$0xff] %vm254_vm0, %v241_v32  ;;  %v164_v41 = vsel %vm163_vm9, %v2034_v61, %v162_v35  ;;  %1621 = vrsqrt.f32 %v2066_v37  ;;  %vm207_vm7 = vcmp.eq.f32.partialorder %v2064_v36, 0.0  ;;  %v208_v18 = vand.u32 2147483648, %v2064_v36 }
  0xcc   :  { %v1612_v42 = vpop.eup %1611  ;;  %256 = vst.msk [vmem:[#allocation4 + $0x8] sm:$0xff] %vm254_vm0, %v239_v38  ;;  %v167_v43 = vsel %vm165_vm10, %v166_v30, %v164_v41  ;;  %v157_v45 = vsel %vm156_vm11, %v2036_v62, %v155_v39  ;;  %vm198_vm8 = vcmp.eq.f32.partialorder %v2066_v37, inf  ;;  %v201_v27 = vand.u32 2147483648, %v2066_v37 }
  0xcd   :  { %v1614_v48 = vpop.eup %1613  ;;  %v243_v49 = vmul.f32 0.05, %v167_v43  ;;  %v160_v51 = vsel %vm158_vm12, %v159_v40, %v157_v45  ;;  %v176_v52 = vmul.f32 %v1612_v42, %v2040_v3  ;;  %v2090_v55 = vpop.xlane.xlu1 %120  ;;  %vm200_vm9 = vcmp.eq.f32.partialorder %v2066_v37, 0.0 }
  0xce   :  { %v2092_v56 = vpop.xlane.xlu0 %118  ;;  %v242_v57 = vmul.f32 0.05, %v160_v51  ;;  %v169_v58 = vmul.f32 %v1614_v48, %v2042_v4  ;;  %1623 = vrsqrt.f32 %v2090_v55  ;;  %vm219_vm10 = vcmp.eq.f32.partialorder %v2090_v55, inf }
  0xcf   :  { %260 = vst.msk [vmem:[#allocation4 + $0x28] sm:$0xff] %vm254_vm0, %v243_v49  ;;  %v178_v59 = vsel %vm177_vm13, %v2040_v3, %v176_v52  ;;  %v2103_v60 = vld [vmem:[#allocation4] sm:$0xff]  ;;  %1625 = vrsqrt.f32 %v2092_v56  ;;  %v187_v3 = vand.u32 2147483648, %v2048_v20  ;;  %vm221_vm11 = vcmp.eq.f32.partialorder %v2090_v55, 0.0 }
  0xd0   :  { %v1616_v61 = vpop.eup %1615  ;;  %259 = vst.msk [vmem:[#allocation4 + $0x20] sm:$0xff] %vm254_vm0, %v242_v57  ;;  %v181_v62 = vsel %vm179_vm14, %v180_v46, %v178_v59  ;;  %v171_v63 = vsel %vm170_vm15, %v2042_v4, %v169_v58  ;;  %483 = vperm.xlu0 %1597, %v2103_v60   ;;  %v222_v34 = vand.u32 2147483648, %v2090_v55  ;;  %vm212_vm12 = vcmp.eq.f32.partialorder %v2092_v56, inf }
  0xd1   :  { %v1618_v1 = vpop.eup %1617  ;;  %v245_v2 = vmul.f32 0.05, %v181_v62  ;;  %v174_v5 = vsel %vm172_vm1, %v173_v53, %v171_v63  ;;  %v190_v6 = vmul.f32 %v1616_v61, %v2046_v19  ;;  %v2119_v7 = vpop.xlane.xlu1 %124  ;;  %v215_v41 = vand.u32 2147483648, %v2092_v56 }
  0xd2   :  { %v2121_v8 = vpop.xlane.xlu0 %122  ;;  %v244_v9 = vmul.f32 0.05, %v174_v5  ;;  %v183_v10 = vmul.f32 %v1618_v1, %v2048_v20  ;;  %1627 = vrsqrt.f32 %v2119_v7  ;;  %vm214_vm13 = vcmp.eq.f32.partialorder %v2092_v56, 0.0  ;;  %v467_v43 = vld [vmem:[#allocation4 + $0x18] sm:$0xff] }
  0xd3   :  { %262 = vst.msk [vmem:[#allocation4 + $0x38] sm:$0xff] %vm254_vm0, %v245_v2  ;;  %v192_v4 = vsel %vm191_vm2, %v2046_v19, %v190_v6  ;;  %v465_v13 = vld [vmem:[#allocation4 + $0x8] sm:$0xff]  ;;  %1629 = vrsqrt.f32 %v2121_v8  ;;  %vm233_vm14 = vcmp.eq.f32.partialorder %v2119_v7, inf  ;;  %vm235_vm15 = vcmp.eq.f32.partialorder %v2119_v7, 0.0 }
  0xd4   :  { %v1620_v15 = vpop.eup %1619  ;;  %261 = vst.msk [vmem:[#allocation4 + $0x30] sm:$0xff] %vm254_vm0, %v244_v9  ;;  %v195_v16 = vsel %vm193_vm3, %v194_v0, %v192_v4  ;;  %v185_v17 = vsel %vm184_vm4, %v2048_v20, %v183_v10  ;;  %488 = vperm.xlu1 %1598, %v465_v13   ;;  %v2153_v20 = vld [vmem:[#allocation4 + $0x10] sm:$0xff]  ;;  %v236_v49 = vand.u32 2147483648, %v2119_v7  ;;  %vm226_vm1 = vcmp.eq.f32.partialorder %v2121_v8, inf }
  0xd5   :  { %v1622_v21 = vpop.eup %1621  ;;  %v247_v22 = vmul.f32 0.05, %v195_v16  ;;  %v188_v25 = vsel %vm186_vm5, %v187_v3, %v185_v17  ;;  %v204_v26 = vmul.f32 %v1620_v15, %v2064_v36  ;;  %v229_v58 = vand.u32 2147483648, %v2121_v8 }
  0xd6   :  { %v246_v19 = vmul.f32 0.05, %v188_v25  ;;  %v197_v28 = vmul.f32 %v1622_v21, %v2066_v37  ;;  %vm228_vm2 = vcmp.eq.f32.partialorder %v2121_v8, 0.0  ;;  %v469_v3 = vld [vmem:[#allocation4 + $0x28] sm:$0xff]  ;;  %v1061_v17 = vmul.f32 %v1972_v12, %v1972_v12 }
  0xd7   :  { %264 = vst.msk [vmem:[#allocation4 + $0x48] sm:$0xff] %vm254_vm0, %v247_v22  ;;  %v206_v29 = vsel %vm205_vm6, %v2064_v36, %v204_v26  ;;  %v468_v62 = vld [vmem:[#allocation4 + $0x20] sm:$0xff]  ;;  %v1060_v21 = vmul.f32 %v1970_v11, %v1970_v11  ;;  %v1908_v22 = vmov -inf  }
  0xd8   :  { %v1624_v30 = vpop.eup %1623  ;;  %263 = vst.msk [vmem:[#allocation4 + $0x40] sm:$0xff] %vm254_vm0, %v246_v19  ;;  %v209_v31 = vsel %vm207_vm7, %v208_v18, %v206_v29  ;;  %v199_v32 = vsel %vm198_vm8, %v2066_v37, %v197_v28  ;;  %493 = vperm.xlu1 %1598, %v2153_v20   ;;  %v1062_v18 = vmul.f32 %v1976_v14, %v1976_v14  ;;  %271 = vst.msk [vmem:[#allocation2] sm:$0xff] %vm254_vm0, %v1908_v22 }
  0xd9   :  { %v1626_v35 = vpop.eup %1625  ;;  %v249_v38 = vmul.f32 0.05, %v209_v31  ;;  %v202_v39 = vsel %vm200_vm9, %v201_v27, %v199_v32  ;;  %v218_v40 = vmul.f32 %v1624_v30, %v2090_v55  ;;  %272 = vst.msk [vmem:[#allocation2 + $0x8] sm:$0xff] %vm254_vm0, %v1908_v22  ;;  %273 = vst.msk [vmem:[#allocation2 + $0x10] sm:$0xff] %vm254_vm0, %v1908_v22 }
  0xda   :  { %v248_v42 = vmul.f32 0.05, %v202_v39  ;;  %v211_v36 = vmul.f32 %v1626_v35, %v2092_v56  ;;  %v471_v4 = vld [vmem:[#allocation4 + $0x38] sm:$0xff]  ;;  %274 = vst.msk [vmem:[#allocation2 + $0x18] sm:$0xff] %vm254_vm0, %v1908_v22  ;;  %275 = vst.msk [vmem:[#allocation2 + $0x20] sm:$0xff] %vm254_vm0, %v1908_v22 }
  0xdb   :  { %266 = vst.msk [vmem:[#allocation4 + $0x58] sm:$0xff] %vm254_vm0, %v249_v38  ;;  %v220_v37 = vsel %vm219_vm10, %v2090_v55, %v218_v40  ;;  %276 = vst.msk [vmem:[#allocation2 + $0x28] sm:$0xff] %vm254_vm0, %v1908_v22  ;;  %v2243_v38 = vld [vmem:[%s2941_s2] ss:$0 sm:$0xff] }
  0xdc   :  { %v1628_v45 = vpop.eup %1627  ;;  %265 = vst.msk [vmem:[#allocation4 + $0x50] sm:$0xff] %vm254_vm0, %v248_v42  ;;  %v223_v46 = vsel %vm221_vm11, %v222_v34, %v220_v37  ;;  %v213_v48 = vsel %vm212_vm12, %v2092_v56, %v211_v36  ;;  %498 = vperm.xlu1 %1598, %v467_v43   ;;  %277 = vst.msk [vmem:[#allocation2 + $0x30] sm:$0xff] %vm254_vm0, %v1908_v22 }
  0xdd   :  { %v1630_v51 = vpop.eup %1629  ;;  %v251_v52 = vmul.f32 0.05, %v223_v46  ;;  %v216_v53 = vsel %vm214_vm13, %v215_v41, %v213_v48  ;;  %v232_v57 = vmul.f32 %v1628_v45, %v2119_v7  ;;  %278 = vst.msk [vmem:[#allocation2 + $0x38] sm:$0xff] %vm254_vm0, %v1908_v22  ;;  %279 = vst.msk [vmem:[#allocation2 + $0x40] sm:$0xff] %vm254_vm0, %v1908_v22  ;;  %v632_v46 = vlaneseq }
  0xde   :  { %v250_v59 = vmul.f32 0.05, %v216_v53  ;;  %v225_v55 = vmul.f32 %v1630_v51, %v2121_v8  ;;  %v473_v61 = vld [vmem:[#allocation4 + $0x48] sm:$0xff]  ;;  %280 = vst.msk [vmem:[#allocation2 + $0x48] sm:$0xff] %vm254_vm0, %v1908_v22  ;;  %281 = vst.msk [vmem:[#allocation2 + $0x50] sm:$0xff] %vm254_vm0, %v1908_v22 }
  0xdf   :  { %268 = vst.msk [vmem:[#allocation4 + $0x68] sm:$0xff] %vm254_vm0, %v251_v52  ;;  %v234_v56 = vsel %vm233_vm14, %v2119_v7, %v232_v57  ;;  %528 = vperm.xlu0 %1597, %v473_v61   ;;  %v470_v7 = vld [vmem:[#allocation4 + $0x30] sm:$0xff]  ;;  %282 = vst.msk [vmem:[#allocation2 + $0x58] sm:$0xff] %vm254_vm0, %v1908_v22  ;;  %v2252_v52 = vand.u32 127, %v632_v46 }
  0xe0   :  { %267 = vst.msk [vmem:[#allocation4 + $0x60] sm:$0xff] %vm254_vm0, %v250_v59  ;;  %v237_v63 = vsel %vm235_vm15, %v236_v49, %v234_v56  ;;  %v227_v0 = vsel %vm226_vm1, %v2121_v8, %v225_v55  ;;  %503 = vperm.xlu1 %1598, %v468_v62   ;;  %v472_v8 = vld [vmem:[#allocation4 + $0x40] sm:$0xff]  ;;  %283 = vst.msk [vmem:[#allocation2 + $0x60] sm:$0xff] %vm254_vm0, %v1908_v22 }
  0xe1   :  { %v253_v1 = vmul.f32 0.05, %v237_v63  ;;  %v230_v2 = vsel %vm228_vm2, %v229_v58, %v227_v0  ;;  %284 = vst.msk [vmem:[#allocation2 + $0x68] sm:$0xff] %vm254_vm0, %v1908_v22  ;;  %285 = vst.msk [vmem:[#allocation2 + $0x70] sm:$0xff] %vm254_vm0, %v1908_v22  ;;  %vm636_vm3 = vcmp.lt.s32.totalorder %v2252_v52, 8  ;;  %v1065_v52 = vmul.f32 %v1993_v24, %v1993_v24  ;;  %v1825_v24 = vld [vmem:[#allocation8] sm:$0xff] }
  0xe2   :  { %v252_v5 = vmul.f32 0.05, %v230_v2  ;;  %v475_v6 = vld [vmem:[#allocation4 + $0x58] sm:$0xff]  ;;  %286 = vst.msk [vmem:[#allocation2 + $0x78] sm:$0xff] %vm254_vm0, %v1908_v22 }
  0xe3   :  { %270 = vst.msk [vmem:[#allocation4 + $0x78] sm:$0xff] %vm254_vm0, %v253_v1  ;;  %538 = vperm.xlu0 %1597, %v475_v6   ;;  %v474_v13 = vld [vmem:[#allocation4 + $0x50] sm:$0xff] }
  0xe4   :  { %269 = vst.msk [vmem:[#allocation4 + $0x70] sm:$0xff] %vm254_vm0, %v252_v5  ;;  %508 = vperm.xlu1 %1598, %v469_v3  }
  0xe6   :  { %v477_v9 = vld [vmem:[#allocation4 + $0x68] sm:$0xff] }
  0xe7   :  { %548 = vperm.xlu0 %1597, %v477_v9   ;;  %v476_v15 = vld [vmem:[#allocation4 + $0x60] sm:$0xff] }
  0xe8   :  { %513 = vperm.xlu1 %1598, %v470_v7  }
  0xea   :  { %v479_v10 = vld [vmem:[#allocation4 + $0x78] sm:$0xff] }
  0xeb   :  { %558 = vperm.xlu0 %1597, %v479_v10   ;;  %v478_v16 = vld [vmem:[#allocation4 + $0x70] sm:$0xff] }
  0xec   :  { %518 = vperm.xlu1 %1598, %v471_v4  }
  0xf0   :  { %523 = vperm.xlu1 %1598, %v472_v8  }
  0xf4   :  { %533 = vperm.xlu1 %1598, %v474_v13  }
  0xf8   :  { %543 = vperm.xlu1 %1598, %v476_v15  }
  0xfc   :  { %553 = vperm.xlu1 %1598, %v478_v16  }
 0x10a   :  { %1078 = vadd.xlane.f32.xlu0 %v1061_v17 }
 0x10e   :  { %1080 = vadd.xlane.f32.xlu0 %v1062_v18 }
 0x120   :  { %1076 = vadd.xlane.f32.xlu1 %v1060_v21 }
 0x13f   :  { %v1520_v11 = vpop.f32.mrb[0].mxu0  ;;  %v2220_v12 = vpop.f32.mrb[0].mxu1 }
 0x140   :  { %v385_v14 = vpop.f32.mrb[1].mxu0  ;;  %v2222_v25 = vpop.f32.mrb[1].mxu1 }
 0x143   :  { %v1523_v26 = vpop.f32.mrb[2].mxu0  ;;  %v2224_v27 = vpop.f32.mrb[2].mxu1 }
 0x144   :  { %v395_v19 = vpop.f32.mrb[3].mxu0  ;;  %v2226_v28 = vpop.f32.mrb[3].mxu1 }
 0x147   :  { %v2228_v29 = vpop.f32.mrb[4].mxu0  ;;  %v2230_v30 = vpop.f32.mrb[4].mxu1 }
 0x148   :  { %v2232_v31 = vpop.f32.mrb[5].mxu0  ;;  %v2234_v32 = vpop.f32.mrb[5].mxu1 }
 0x14b   :  { %v2236_v34 = vpop.f32.mrb[6].mxu0  ;;  %v2238_v35 = vpop.f32.mrb[6].mxu1 }
 0x14c   :  { %v2245_v39 = vpop.f32.mrb[7].mxu0  ;;  %v2247_v40 = vpop.f32.mrb[7].mxu1 }
 0x14f   :  { %v484_v41 = vpop.permute.xlu0 %483 }
 0x150   :  { %v567_v42 = vmul.f32 %v2243_v38, %v484_v41 }
 0x152   :  { %v583_v36 = vmax.f32 %v567_v42, 5e-10 }
 0x153   :  { %v489_v37 = vpop.permute.xlu1 %488 }
 0x154   :  { %1631 = vrcp.f32 %v583_v36  ;;  %v568_v43 = vmul.f32 %v2243_v38, %v489_v37 }
 0x156   :  { %v584_v45 = vmax.f32 %v568_v43, 5e-10 }
 0x157   :  { %v494_v48 = vpop.permute.xlu1 %493 }
 0x158   :  { %1633 = vrcp.f32 %v584_v45  ;;  %v569_v49 = vmul.f32 %v2243_v38, %v494_v48 }
 0x15a   :  { %v585_v51 = vmax.f32 %v569_v49, 5e-10 }
 0x15b   :  { %v499_v53 = vpop.permute.xlu1 %498 }
 0x15c   :  { %1635 = vrcp.f32 %v585_v51  ;;  %v570_v57 = vmul.f32 %v2243_v38, %v499_v53 }
 0x15e   :  { %v1632_v58 = vpop.eup %1631  ;;  %v586_v59 = vmax.f32 %v570_v57, 5e-10  ;;  %v529_v55 = vpop.permute.xlu0 %528 }
 0x15f   :  { %v615_v61 = vmul.f32 %v1632_v58, %v385_v14  ;;  %v504_v56 = vpop.permute.xlu1 %503  ;;  %v576_v4 = vmul.f32 %v2243_v38, %v529_v55 }
 0x160   :  { %1637 = vrcp.f32 %v586_v59  ;;  %v571_v62 = vmul.f32 %v2243_v38, %v504_v56 }
 0x161   :  { %v2259_v63 = vsel %vm636_vm3, %v615_v61, -1e+30  ;;  %v592_v22 = vmax.f32 %v576_v4, 5e-10  ;;  %v1909_v4 = vmov 0.0  }
 0x162   :  { %v1634_v0 = vpop.eup %1633  ;;  %v587_v1 = vmax.f32 %v571_v62, 5e-10  ;;  %671 = vmax.xlane.f32.xlu1 %v2259_v63  ;;  %v539_v3 = vpop.permute.xlu0 %538  ;;  %303 = vst.msk [vmem:[#allocation5] sm:$0xff] %vm254_vm0, %v1909_v4  ;;  %287 = vst.msk [vmem:[#allocation3] sm:$0xff] %vm254_vm0, %v1909_v4 }
 0x163   :  { %v616_v2 = vmul.f32 %v1634_v0, %v1520_v11  ;;  %v509_v5 = vpop.permute.xlu1 %508  ;;  %v578_v11 = vmul.f32 %v2243_v38, %v539_v3  ;;  %288 = vst.msk [vmem:[#allocation3 + $0x8] sm:$0xff] %vm254_vm0, %v1909_v4  ;;  %289 = vst.msk [vmem:[#allocation3 + $0x10] sm:$0xff] %vm254_vm0, %v1909_v4 }
 0x164   :  { %1639 = vrcp.f32 %v587_v1  ;;  %v572_v6 = vmul.f32 %v2243_v38, %v509_v5  ;;  %290 = vst.msk [vmem:[#allocation3 + $0x18] sm:$0xff] %vm254_vm0, %v1909_v4  ;;  %291 = vst.msk [vmem:[#allocation3 + $0x20] sm:$0xff] %vm254_vm0, %v1909_v4 }
 0x165   :  { %v2265_v9 = vsel %vm636_vm3, %v616_v2, -1e+30  ;;  %v594_v43 = vmax.f32 %v578_v11, 5e-10  ;;  %292 = vst.msk [vmem:[#allocation3 + $0x28] sm:$0xff] %vm254_vm0, %v1909_v4  ;;  %293 = vst.msk [vmem:[#allocation3 + $0x30] sm:$0xff] %vm254_vm0, %v1909_v4 }
 0x166   :  { %v1636_v7 = vpop.eup %1635  ;;  %v588_v10 = vmax.f32 %v572_v6, 5e-10  ;;  %673 = vmax.xlane.f32.xlu0 %v2265_v9  ;;  %v549_v21 = vpop.permute.xlu0 %548  ;;  %294 = vst.msk [vmem:[#allocation3 + $0x38] sm:$0xff] %vm254_vm0, %v1909_v4  ;;  %295 = vst.msk [vmem:[#allocation3 + $0x40] sm:$0xff] %vm254_vm0, %v1909_v4 }
 0x167   :  { %v617_v8 = vmul.f32 %v1636_v7, %v395_v19  ;;  %v514_v13 = vpop.permute.xlu1 %513  ;;  %v580_v45 = vmul.f32 %v2243_v38, %v549_v21  ;;  %296 = vst.msk [vmem:[#allocation3 + $0x48] sm:$0xff] %vm254_vm0, %v1909_v4  ;;  %297 = vst.msk [vmem:[#allocation3 + $0x50] sm:$0xff] %vm254_vm0, %v1909_v4 }
 0x168   :  { %1641 = vrcp.f32 %v588_v10  ;;  %v573_v15 = vmul.f32 %v2243_v38, %v514_v13  ;;  %298 = vst.msk [vmem:[#allocation3 + $0x58] sm:$0xff] %vm254_vm0, %v1909_v4  ;;  %299 = vst.msk [vmem:[#allocation3 + $0x60] sm:$0xff] %vm254_vm0, %v1909_v4 }
 0x169   :  { %v2272_v16 = vsel %vm636_vm3, %v617_v8, -1e+30  ;;  %v596_v58 = vmax.f32 %v580_v45, 5e-10  ;;  %300 = vst.msk [vmem:[#allocation3 + $0x68] sm:$0xff] %vm254_vm0, %v1909_v4  ;;  %301 = vst.msk [vmem:[#allocation3 + $0x70] sm:$0xff] %vm254_vm0, %v1909_v4 }
 0x16a   :  { %v1638_v17 = vpop.eup %1637  ;;  %v589_v18 = vmax.f32 %v573_v15, 5e-10  ;;  %675 = vmax.xlane.f32.xlu0 %v2272_v16  ;;  %302 = vst.msk [vmem:[#allocation3 + $0x78] sm:$0xff] %vm254_vm0, %v1909_v4  ;;  %304 = vst.msk [vmem:[#allocation5 + $0x8] sm:$0xff] %vm254_vm0, %v1909_v4 }
 0x16b   :  { %v618_v14 = vmul.f32 %v1638_v17, %v1523_v26  ;;  %v519_v41 = vpop.permute.xlu1 %518  ;;  %v559_v26 = vpop.permute.xlu0 %558  ;;  %305 = vst.msk [vmem:[#allocation5 + $0x10] sm:$0xff] %vm254_vm0, %v1909_v4  ;;  %306 = vst.msk [vmem:[#allocation5 + $0x18] sm:$0xff] %vm254_vm0, %v1909_v4 }
 0x16c   :  { %1643 = vrcp.f32 %v589_v18  ;;  %v574_v19 = vmul.f32 %v2243_v38, %v519_v41  ;;  %v582_v59 = vmul.f32 %v2243_v38, %v559_v26  ;;  %307 = vst.msk [vmem:[#allocation5 + $0x20] sm:$0xff] %vm254_vm0, %v1909_v4  ;;  %308 = vst.msk [vmem:[#allocation5 + $0x28] sm:$0xff] %vm254_vm0, %v1909_v4 }
 0x16d   :  { %v2279_v42 = vsel %vm636_vm3, %v618_v14, -1e+30  ;;  %1645 = vrcp.f32 %v592_v22  ;;  %309 = vst.msk [vmem:[#allocation5 + $0x30] sm:$0xff] %vm254_vm0, %v1909_v4  ;;  %310 = vst.msk [vmem:[#allocation5 + $0x38] sm:$0xff] %vm254_vm0, %v1909_v4 }
 0x16e   :  { %v1640_v36 = vpop.eup %1639  ;;  %v590_v37 = vmax.f32 %v574_v19, 5e-10  ;;  %677 = vmax.xlane.f32.xlu1 %v2279_v42  ;;  %v598_v1 = vmax.f32 %v582_v59, 5e-10  ;;  %311 = vst.msk [vmem:[#allocation5 + $0x40] sm:$0xff] %vm254_vm0, %v1909_v4  ;;  %312 = vst.msk [vmem:[#allocation5 + $0x48] sm:$0xff] %vm254_vm0, %v1909_v4  ;;  %v1072_v59 = vmul.f32 %v2018_v50, %v2018_v50 }
 0x16f   :  { %v619_v46 = vmul.f32 %v1640_v36, %v2232_v31  ;;  %v524_v48 = vpop.permute.xlu1 %523  ;;  %313 = vst.msk [vmem:[#allocation5 + $0x50] sm:$0xff] %vm254_vm0, %v1909_v4  ;;  %314 = vst.msk [vmem:[#allocation5 + $0x58] sm:$0xff] %vm254_vm0, %v1909_v4 }
 0x170   :  { %1647 = vrcp.f32 %v590_v37  ;;  %v575_v49 = vmul.f32 %v2243_v38, %v524_v48  ;;  %315 = vst.msk [vmem:[#allocation5 + $0x60] sm:$0xff] %vm254_vm0, %v1909_v4  ;;  %316 = vst.msk [vmem:[#allocation5 + $0x68] sm:$0xff] %vm254_vm0, %v1909_v4 }
 0x171   :  { %v2287_v51 = vsel %vm636_vm3, %v619_v46, -1e+30  ;;  %1649 = vrcp.f32 %v594_v43  ;;  %317 = vst.msk [vmem:[#allocation5 + $0x70] sm:$0xff] %vm254_vm0, %v1909_v4  ;;  %318 = vst.msk [vmem:[#allocation5 + $0x78] sm:$0xff] %vm254_vm0, %v1909_v4 }
 0x172   :  { %v1642_v53 = vpop.eup %1641  ;;  %v591_v57 = vmax.f32 %v575_v49, 5e-10  ;;  %679 = vmax.xlane.f32.xlu0 %v2287_v51  ;;  %v1064_v49 = vmul.f32 %v1991_v23, %v1991_v23  ;;  %v1070_v23 = vmul.f32 %v2015_v47, %v2015_v47 }
 0x173   :  { %v620_v55 = vmul.f32 %v1642_v53, %v2228_v29  ;;  %v534_v31 = vpop.permute.xlu1 %533  ;;  %v2394_v53 = vld [vmem:[#allocation8 + $0x18] sm:$0xff] }
 0x174   :  { %1651 = vrcp.f32 %v591_v57  ;;  %v577_v61 = vmul.f32 %v2243_v38, %v534_v31  ;;  %v1066_v57 = vmul.f32 %v2009_v33, %v2009_v33  ;;  %v1074_v33 = vmul.f32 %v2021_v54, %v2021_v54 }
 0x175   :  { %v2295_v56 = vsel %vm636_vm3, %v620_v55, -1e+30  ;;  %1653 = vrcp.f32 %v596_v58  ;;  %v1068_v58 = vmul.f32 %v2012_v44, %v2012_v44  ;;  %v1824_v55 = vld [vmem:[#allocation6] sm:$0xff] }
 0x176   :  { %v1644_v62 = vpop.eup %1643  ;;  %v593_v0 = vmax.f32 %v577_v61, 5e-10  ;;  %681 = vmax.xlane.f32.xlu1 %v2295_v56  ;;  %v1012_v31 = vmul.f32 %v1825_v24, %v1824_v55  ;;  %v1826_v61 = vld [vmem:[#allocation6 + $0x10] sm:$0xff] }
 0x177   :  { %v621_v2 = vmul.f32 %v1644_v62, %v2245_v39  ;;  %v544_v5 = vpop.permute.xlu1 %543  ;;  %v1646_v6 = vpop.eup %1645  ;;  %v1827_v62 = vld [vmem:[#allocation8 + $0x10] sm:$0xff] }
 0x178   :  { %1655 = vrcp.f32 %v593_v0  ;;  %v579_v29 = vmul.f32 %v2243_v38, %v544_v5  ;;  %v624_v17 = vmul.f32 %v1646_v6, %v2220_v12  ;;  %v1014_v44 = vmul.f32 %v1827_v62, %v1826_v61  ;;  %v2421_v5 = vld [vmem:[#allocation2 + $0x8] sm:$0xff]  ;;  %v2509_v61 = vld [vmem:[#allocation2 + $0x50] sm:$0xff] }
 0x179   :  { %v2302_v3 = vsel %vm636_vm3, %v621_v2, -1e+30  ;;  %1657 = vrcp.f32 %v598_v1  ;;  %v2414_v1 = vld [vmem:[#allocation2] sm:$0xff]  ;;  %v2550_v62 = vld [vmem:[#allocation2 + $0x70] sm:$0xff] }
 0x17a   :  { %v1648_v7 = vpop.eup %1647  ;;  %v595_v10 = vmax.f32 %v579_v29, 5e-10  ;;  %683 = vmax.xlane.f32.xlu0 %v2302_v3  ;;  %v2353_v12 = vsel %vm636_vm3, %v624_v17, -1e+30  ;;  %2960 = vst [vmem:[#allocation18_spill] sm:$0xff] %v2550_v62 }
 0x17b   :  { %v622_v39 = vmul.f32 %v1648_v7, %v2236_v34  ;;  %v554_v8 = vpop.permute.xlu1 %553  ;;  %v1650_v15 = vpop.eup %1649 }
 0x17c   :  { %1659 = vrcp.f32 %v595_v10  ;;  %v581_v13 = vmul.f32 %v2243_v38, %v554_v8  ;;  %v626_v34 = vmul.f32 %v1650_v15, %v2224_v27  ;;  %v2431_v10 = vld [vmem:[#allocation2 + $0x10] sm:$0xff] }
 0x17d   :  { %v2342_v18 = vsel %vm636_vm3, %v622_v39, -1e+30 }
 0x17e   :  { %v1652_v21 = vpop.eup %1651  ;;  %v597_v22 = vmax.f32 %v581_v13, 5e-10  ;;  %685 = vmax.xlane.f32.xlu1 %v2342_v18  ;;  %v2365_v37 = vsel %vm636_vm3, %v626_v34, -1e+30  ;;  %v2441_v13 = vld [vmem:[#allocation2 + $0x18] sm:$0xff] }
 0x17f   :  { %v623_v11 = vmul.f32 %v1652_v21, %v2222_v25  ;;  %v1654_v14 = vpop.eup %1653 }
 0x180   :  { %1661 = vrcp.f32 %v597_v22  ;;  %v628_v36 = vmul.f32 %v1654_v14, %v2230_v30  ;;  %v2451_v22 = vld [vmem:[#allocation2 + $0x20] sm:$0xff] }
 0x181   :  { %v2349_v38 = vsel %vm636_vm3, %v623_v11, -1e+30 }
 0x182   :  { %v1656_v41 = vpop.eup %1655  ;;  %687 = vmax.xlane.f32.xlu0 %v2349_v38  ;;  %689 = vmax.xlane.f32.xlu1 %v2353_v12  ;;  %v2377_v46 = vsel %vm636_vm3, %v628_v36, -1e+30 }
 0x183   :  { %v625_v19 = vmul.f32 %v1656_v41, %v2226_v28  ;;  %v1658_v25 = vpop.eup %1657  ;;  %v2461_v41 = vld [vmem:[#allocation2 + $0x28] sm:$0xff] }
 0x184   :  { %v630_v28 = vmul.f32 %v1658_v25, %v2238_v35 }
 0x185   :  { %v2361_v27 = vsel %vm636_vm3, %v625_v19, -1e+30 }
 0x186   :  { %v1660_v43 = vpop.eup %1659  ;;  %691 = vmax.xlane.f32.xlu0 %v2361_v27  ;;  %693 = vmax.xlane.f32.xlu1 %v2365_v37  ;;  %v2388_v35 = vsel %vm636_vm3, %v630_v28, -1e+30 }
 0x187   :  { %v627_v45 = vmul.f32 %v1660_v43, %v2234_v32  ;;  %v2471_v43 = vld [vmem:[#allocation2 + $0x30] sm:$0xff] }
 0x189   :  { %v2373_v30 = vsel %vm636_vm3, %v627_v45, -1e+30 }
 0x18a   :  { %v1662_v48 = vpop.eup %1661  ;;  %695 = vmax.xlane.f32.xlu0 %v2373_v30  ;;  %697 = vmax.xlane.f32.xlu1 %v2377_v46 }
 0x18b   :  { %v629_v26 = vmul.f32 %v1662_v48, %v2247_v40  ;;  %v1063_v40 = vmul.f32 %v2394_v53, %v2394_v53 }
 0x18d   :  { %v2384_v32 = vsel %vm636_vm3, %v629_v26, -1e+30  ;;  %v2481_v26 = vld [vmem:[#allocation2 + $0x38] sm:$0xff] }
 0x18e   :  { %699 = vmax.xlane.f32.xlu0 %v2384_v32  ;;  %701 = vmax.xlane.f32.xlu1 %v2388_v35 }
 0x192   :  { %1084 = vadd.xlane.f32.xlu0 %v1064_v49  ;;  %1082 = vadd.xlane.f32.xlu1 %v1063_v40 }
 0x196   :  { %1088 = vadd.xlane.f32.xlu0 %v1066_v57  ;;  %1086 = vadd.xlane.f32.xlu1 %v1065_v52  ;;  %v2491_v52 = vld [vmem:[#allocation2 + $0x48] sm:$0xff] }
 0x197   :  { %v2410_v0 = vpop.xlane.xlu0 %1078 }
 0x198   :  { %vm1117_vm12 = vcmp.eq.f32.partialorder %v2410_v0, inf  ;;  %vm1119_vm13 = vcmp.eq.f32.partialorder %v2410_v0, 0.0 }
 0x19a   :  { %1092 = vadd.xlane.f32.xlu0 %v1068_v58  ;;  %v2493_v58 = vld [vmem:[#allocation2 + $0x40] sm:$0xff] }
 0x19b   :  { %v2416_v50 = vpop.xlane.xlu0 %1080 }
 0x19c   :  { %vm1124_vm6 = vcmp.eq.f32.partialorder %v2416_v50, inf  ;;  %v1127_v15 = vand.u32 2147483648, %v2416_v50  ;;  %vm1126_vm7 = vcmp.eq.f32.partialorder %v2416_v50, 0.0 }
 0x19e   :  { %1096 = vadd.xlane.f32.xlu0 %v1070_v23 }
 0x1a2   :  { %1100 = vadd.xlane.f32.xlu0 %v1072_v59 }
 0x1a6   :  { %1104 = vadd.xlane.f32.xlu0 %v1074_v33 }
 0x1aa   :  { %1028 = vadd.xlane.f32.xlu0 %v1012_v31  ;;  %v2507_v31 = vld [vmem:[#allocation2 + $0x58] sm:$0xff] }
 0x1ad   :  { %v2412_v47 = vpop.xlane.xlu1 %1076 }
 0x1ae   :  { %1032 = vadd.xlane.f32.xlu0 %v1014_v44  ;;  %1663 = vrsqrt.f32 %v2412_v47  ;;  %v2548_v44 = vld [vmem:[#allocation2 + $0x78] sm:$0xff]  ;;  %vm1110_vm4 = vcmp.eq.f32.partialorder %v2412_v47, inf  ;;  %v1113_v23 = vand.u32 2147483648, %v2412_v47  ;;  %vm1112_vm5 = vcmp.eq.f32.partialorder %v2412_v47, 0.0 }
 0x1af   :  { %1665 = vrsqrt.f32 %v2416_v50  ;;  %2959 = vst [vmem:[#allocation17_spill] sm:$0xff] %v2548_v44 }
 0x1ef   :  { %v672_v2 = vpop.xlane.xlu1 %671 }
 0x1f0   :  { %v2419_v54 = vmax.f32 %v2414_v1, %v672_v2 }
 0x1f2   :  { %992 = vst.msk [vmem:[#allocation2] sm:$0xff] %vm254_vm0, %v2419_v54  ;;  %801 = vperm.xlu0 %1597, %v2419_v54  }
 0x1f3   :  { %v674_v6 = vpop.xlane.xlu0 %673 }
 0x1f4   :  { %v2429_v7 = vmax.f32 %v2421_v5, %v674_v6 }
 0x1f6   :  { %993 = vst.msk [vmem:[#allocation2 + $0x8] sm:$0xff] %vm254_vm0, %v2429_v7  ;;  %806 = vperm.xlu1 %1598, %v2429_v7  }
 0x1f7   :  { %v676_v39 = vpop.xlane.xlu0 %675 }
 0x1f8   :  { %v2439_v8 = vmax.f32 %v2431_v10, %v676_v39 }
 0x1fa   :  { %994 = vst.msk [vmem:[#allocation2 + $0x10] sm:$0xff] %vm254_vm0, %v2439_v8  ;;  %811 = vperm.xlu1 %1598, %v2439_v8  }
 0x1fb   :  { %v678_v17 = vpop.xlane.xlu1 %677 }
 0x1fc   :  { %v2449_v21 = vmax.f32 %v2441_v13, %v678_v17 }
 0x1fe   :  { %995 = vst.msk [vmem:[#allocation2 + $0x18] sm:$0xff] %vm254_vm0, %v2449_v21  ;;  %816 = vperm.xlu0 %1597, %v2449_v21  }
 0x1ff   :  { %v680_v14 = vpop.xlane.xlu0 %679 }
 0x200   :  { %v2459_v34 = vmax.f32 %v2451_v22, %v680_v14  ;;  %v2528_v14 = vld [vmem:[#allocation2 + $0x68] sm:$0xff] }
 0x201   :  { %2955 = vst [vmem:[#allocation13_spill] sm:$0xff] %v2528_v14 }
 0x202   :  { %996 = vst.msk [vmem:[#allocation2 + $0x20] sm:$0xff] %vm254_vm0, %v2459_v34  ;;  %821 = vperm.xlu1 %1598, %v2459_v34  }
 0x203   :  { %v682_v25 = vpop.xlane.xlu1 %681 }
 0x204   :  { %v2469_v36 = vmax.f32 %v2461_v41, %v682_v25  ;;  %v2530_v25 = vld [vmem:[#allocation2 + $0x60] sm:$0xff] }
 0x205   :  { %2956 = vst [vmem:[#allocation14_spill] sm:$0xff] %v2530_v25 }
 0x206   :  { %997 = vst.msk [vmem:[#allocation2 + $0x28] sm:$0xff] %vm254_vm0, %v2469_v36  ;;  %826 = vperm.xlu0 %1597, %v2469_v36  }
 0x207   :  { %v684_v28 = vpop.xlane.xlu0 %683 }
 0x208   :  { %v2479_v48 = vmax.f32 %v2471_v43, %v684_v28 }
 0x20a   :  { %998 = vst.msk [vmem:[#allocation2 + $0x30] sm:$0xff] %vm254_vm0, %v2479_v48  ;;  %831 = vperm.xlu1 %1598, %v2479_v48  }
 0x20b   :  { %v686_v40 = vpop.xlane.xlu1 %685 }
 0x20c   :  { %v2489_v57 = vmax.f32 %v2481_v26, %v686_v40 }
 0x20e   :  { %999 = vst.msk [vmem:[#allocation2 + $0x38] sm:$0xff] %vm254_vm0, %v2489_v57  ;;  %836 = vperm.xlu0 %1597, %v2489_v57  }
 0x20f   :  { %v690_v59 = vpop.xlane.xlu1 %689  ;;  %v688_v33 = vpop.xlane.xlu0 %687 }
 0x210   :  { %v2502_v55 = vmax.f32 %v2491_v52, %v690_v59  ;;  %v2505_v24 = vmax.f32 %v2493_v58, %v688_v33 }
 0x212   :  { %1001 = vst.msk [vmem:[#allocation2 + $0x48] sm:$0xff] %vm254_vm0, %v2502_v55  ;;  %1000 = vst.msk [vmem:[#allocation2 + $0x40] sm:$0xff] %vm254_vm0, %v2505_v24  ;;  %846 = vperm.xlu0 %1597, %v2502_v55   ;;  %841 = vperm.xlu1 %1598, %v2505_v24  }
 0x213   :  { %v694_v2 = vpop.xlane.xlu1 %693  ;;  %v692_v6 = vpop.xlane.xlu0 %691 }
 0x214   :  { %v2523_v39 = vmax.f32 %v2507_v31, %v694_v2  ;;  %v2526_v17 = vmax.f32 %v2509_v61, %v692_v6  ;;  %v1664_v2 = vpop.eup %1663 }
 0x215   :  { %v1666_v45 = vpop.eup %1665 }
 0x216   :  { %2954 = vst [vmem:[#allocation12_spill] sm:$0xff] %v2526_v17  ;;  %1003 = vst.msk [vmem:[#allocation2 + $0x58] sm:$0xff] %vm254_vm0, %v2523_v39  ;;  %856 = vperm.xlu0 %1597, %v2523_v39   ;;  %851 = vperm.xlu1 %1598, %v2526_v17  }
 0x217   :  { %1002 = vst.msk [vmem:[#allocation2 + $0x50] sm:$0xff] %vm254_vm0, %v2526_v17  ;;  %v698_v59 = vpop.xlane.xlu1 %697  ;;  %v696_v33 = vpop.xlane.xlu0 %695 }
 0x218   :  { %v2543_v6 = vmax.f32 %v2528_v14, %v698_v59  ;;  %v2546_v28 = vmax.f32 %v2530_v25, %v696_v33  ;;  %v1109_v59 = vmul.f32 %v1664_v2, %v2412_v47  ;;  %v1828_v25 = vld [vmem:[#allocation6 + $0x20] sm:$0xff] }
 0x21a   :  { %2957 = vst [vmem:[#allocation15_spill] sm:$0xff] %v2543_v6  ;;  %2958 = vst [vmem:[#allocation16_spill] sm:$0xff] %v2546_v28  ;;  %866 = vperm.xlu0 %1597, %v2543_v6   ;;  %861 = vperm.xlu1 %1598, %v2546_v28  }
 0x21b   :  { %1005 = vst.msk [vmem:[#allocation2 + $0x68] sm:$0xff] %vm254_vm0, %v2543_v6  ;;  %1004 = vst.msk [vmem:[#allocation2 + $0x60] sm:$0xff] %vm254_vm0, %v2546_v28  ;;  %v702_v33 = vpop.xlane.xlu1 %701  ;;  %v700_v49 = vpop.xlane.xlu0 %699 }
 0x21c   :  { %v2565_v40 = vmax.f32 %v2548_v44, %v702_v33  ;;  %v2568_v19 = vmax.f32 %v2550_v62, %v700_v49  ;;  %v1123_v49 = vmul.f32 %v1666_v45, %v2416_v50  ;;  %v1111_v33 = vsel %vm1110_vm4, %v2412_v47, %v1109_v59 }
 0x21d   :  { %v1114_v2 = vsel %vm1112_vm5, %v1113_v23, %v1111_v33 }
 0x21e   :  { %2961 = vst [vmem:[#allocation19_spill] sm:$0xff] %v2565_v40  ;;  %2962 = vst [vmem:[#allocation20_spill] sm:$0xff] %v2568_v19  ;;  %876 = vperm.xlu0 %1597, %v2565_v40   ;;  %871 = vperm.xlu1 %1598, %v2568_v19   ;;  %v1125_v4 = vsel %vm1124_vm6, %v2416_v50, %v1123_v49 }
 0x21f   :  { %1007 = vst.msk [vmem:[#allocation2 + $0x78] sm:$0xff] %vm254_vm0, %v2565_v40  ;;  %1006 = vst.msk [vmem:[#allocation2 + $0x70] sm:$0xff] %vm254_vm0, %v2568_v19  ;;  %v2584_v11 = vpop.xlane.xlu0 %1084  ;;  %v1236_v19 = vmul.f32 %v1114_v2, %v2103_v60  ;;  %v1128_v45 = vsel %vm1126_vm7, %v1127_v15, %v1125_v4  ;;  %v1829_v60 = vld [vmem:[#allocation8 + $0x20] sm:$0xff]  ;;  %v1830_v2 = vld [vmem:[#allocation6 + $0x30] sm:$0xff]  ;;  %v2621_v6 = vpop.xlane.xlu1 %1082 }
 0x220   :  { %v1238_v47 = vmul.f32 %v1128_v45, %v2153_v20  ;;  %v1016_v4 = vmul.f32 %v1829_v60, %v1828_v25  ;;  %v1831_v45 = vld [vmem:[#allocation8 + $0x30] sm:$0xff]  ;;  %vm1138_vm8 = vcmp.eq.f32.partialorder %v2584_v11, inf  ;;  %vm1140_vm9 = vcmp.eq.f32.partialorder %v2584_v11, 0.0 }
 0x221   :  { %v1252_v59 = vmax.f32 %v1236_v19, 5e-10  ;;  %vm1131_vm14 = vcmp.eq.f32.partialorder %v2621_v6, inf  ;;  %vm1133_vm15 = vcmp.eq.f32.partialorder %v2621_v6, 0.0 }
 0x222   :  { %v1254_v44 = vmax.f32 %v1238_v47, 5e-10 }
 0x223   :  { %v2590_v29 = vpop.xlane.xlu0 %1088  ;;  %1667 = vrcp.f32 %v1252_v59  ;;  %v1018_v59 = vmul.f32 %v1831_v45, %v1830_v2  ;;  %v1839_v45 = vld [vmem:[#allocation6 + $0x18] sm:$0xff]  ;;  %v2623_v14 = vpop.xlane.xlu1 %1086 }
 0x224   :  { %1669 = vrcp.f32 %v1254_v44  ;;  %v1832_v44 = vld [vmem:[#allocation8 + $0x38] sm:$0xff]  ;;  %vm1152_vm10 = vcmp.eq.f32.partialorder %v2590_v29, inf  ;;  %vm1154_vm11 = vcmp.eq.f32.partialorder %v2590_v29, 0.0  ;;  %vm1145_vm1 = vcmp.eq.f32.partialorder %v2623_v14, inf }
 0x225   :  { %v1067_v47 = vmul.f32 %v1832_v44, %v1832_v44  ;;  %vm1147_vm2 = vcmp.eq.f32.partialorder %v2623_v14, 0.0 }
 0x227   :  { %v2593_v62 = vpop.xlane.xlu0 %1092 }
 0x228   :  { %vm1166_vm5 = vcmp.eq.f32.partialorder %v2593_v62, inf  ;;  %vm1168_vm7 = vcmp.eq.f32.partialorder %v2593_v62, 0.0 }
 0x22b   :  { %v2596_v40 = vpop.xlane.xlu0 %1096 }
 0x22c   :  { %vm1180_vm6 = vcmp.eq.f32.partialorder %v2596_v40, inf }
 0x22d   :  { %v1668_v50 = vpop.eup %1667 }
 0x22e   :  { %v1670_v15 = vpop.eup %1669 }
 0x22f   :  { %v2598_v28 = vpop.xlane.xlu0 %1100 }
 0x230   :  { %2963 = vst [vmem:[#allocation21_spill] sm:$0xff] %v2598_v28  ;;  %v1842_v28 = vld [vmem:[#allocation6 + $0x38] sm:$0xff] }
 0x233   :  { %v2600_v23 = vpop.xlane.xlu0 %1104 }
 0x234   :  { %2964 = vst [vmem:[#allocation22_spill] sm:$0xff] %v2600_v23  ;;  %v2604_v23 = vld [vmem:[#allocation8 + $0x48] sm:$0xff] }
 0x235   :  { %v1069_v25 = vmul.f32 %v2604_v23, %v2604_v23 }
 0x237   :  { %v1029_v49 = vpop.xlane.xlu0 %1028 }
 0x238   :  { %v1284_v33 = vmul.f32 %v1668_v50, %v1029_v49  ;;  %v2608_v50 = vld [vmem:[#allocation8 + $0x58] sm:$0xff] }
 0x239   :  { %v1071_v49 = vmul.f32 %v2608_v50, %v2608_v50 }
 0x23a   :  { %1300 = vst.msk [vmem:[#allocation5] sm:$0xff] %vm254_vm0, %v1284_v33  ;;  %v2612_v33 = vld [vmem:[#allocation8 + $0x68] sm:$0xff] }
 0x23b   :  { %v1033_v19 = vpop.xlane.xlu0 %1032  ;;  %v1073_v60 = vmul.f32 %v2612_v33, %v2612_v33 }
 0x23c   :  { %v1286_v20 = vmul.f32 %v1670_v15, %v1033_v19  ;;  %v1837_v19 = vld [vmem:[#allocation6 + $0x8] sm:$0xff] }
 0x23d   :  { %1036 = vadd.xlane.f32.xlu0 %v1016_v4  ;;  %v2616_v4 = vld [vmem:[#allocation8 + $0x78] sm:$0xff] }
 0x23e   :  { %1302 = vst.msk [vmem:[#allocation5 + $0x10] sm:$0xff] %vm254_vm0, %v1286_v20  ;;  %v1075_v15 = vmul.f32 %v2616_v4, %v2616_v4  ;;  %v1838_v20 = vld [vmem:[#allocation8 + $0x8] sm:$0xff] }
 0x23f   :  { %v1013_v2 = vmul.f32 %v1838_v20, %v1837_v19 }
 0x241   :  { %1040 = vadd.xlane.f32.xlu0 %v1018_v59  ;;  %v1015_v59 = vmul.f32 %v1839_v45, %v2394_v53 }
 0x242   :  { %1090 = vadd.xlane.f32.xlu1 %v1067_v47  ;;  %v1840_v47 = vld [vmem:[#allocation6 + $0x28] sm:$0xff] }
 0x246   :  { %1094 = vadd.xlane.f32.xlu1 %v1069_v25  ;;  %v1841_v25 = vld [vmem:[#allocation8 + $0x28] sm:$0xff] }
 0x24a   :  { %1098 = vadd.xlane.f32.xlu1 %v1071_v49  ;;  %v1017_v49 = vmul.f32 %v1841_v25, %v1840_v47 }
 0x24e   :  { %1102 = vadd.xlane.f32.xlu1 %v1073_v60  ;;  %v1019_v60 = vmul.f32 %v1842_v28, %v1832_v44 }
 0x252   :  { %1106 = vadd.xlane.f32.xlu1 %v1075_v15 }
 0x256   :  { %1030 = vadd.xlane.f32.xlu1 %v1013_v2 }
 0x25a   :  { %1034 = vadd.xlane.f32.xlu1 %v1015_v59 }
 0x25e   :  { %1038 = vadd.xlane.f32.xlu1 %v1017_v49 }
 0x262   :  { %1042 = vadd.xlane.f32.xlu1 %v1019_v60 }
 0x271   :  { %v802_v15 = vpop.permute.xlu0 %801 }
 0x272   :  { %v879_v17 = vsub.f32 %v2259_v63, %v802_v15 }
 0x274   :  { %v895_v19 = vmul.f32 1.442695, %v879_v17 }
 0x275   :  { %v807_v20 = vpop.permute.xlu1 %806 }
 0x276   :  { %1671 = vpow2.f32 %v895_v19  ;;  %v880_v53 = vsub.f32 %v2265_v9, %v807_v20 }
 0x278   :  { %v897_v2 = vmul.f32 1.442695, %v880_v53 }
 0x279   :  { %v812_v45 = vpop.permute.xlu1 %811 }
 0x27a   :  { %1673 = vpow2.f32 %v897_v2  ;;  %v881_v59 = vsub.f32 %v2272_v16, %v812_v45 }
 0x27c   :  { %v899_v47 = vmul.f32 1.442695, %v881_v59 }
 0x27d   :  { %v817_v28 = vpop.permute.xlu0 %816 }
 0x27e   :  { %1675 = vpow2.f32 %v899_v47  ;;  %v882_v44 = vsub.f32 %v2279_v42, %v817_v28 }
 0x280   :  { %v1672_v25 = vpop.eup %1671  ;;  %v901_v49 = vmul.f32 1.442695, %v882_v44 }
 0x281   :  { %v822_v60 = vpop.permute.xlu1 %821  ;;  %927 = vadd.xlane.f32.xlu0 %v1672_v25 }
 0x282   :  { %1677 = vpow2.f32 %v901_v49  ;;  %v883_v63 = vsub.f32 %v2287_v51, %v822_v60 }
 0x284   :  { %v1674_v17 = vpop.eup %1673  ;;  %v903_v15 = vmul.f32 1.442695, %v883_v63 }
 0x285   :  { %929 = vadd.xlane.f32.xlu1 %v1674_v17  ;;  %v827_v9 = vpop.permute.xlu0 %826 }
 0x286   :  { %1679 = vpow2.f32 %v903_v15  ;;  %v884_v19 = vsub.f32 %v2295_v56, %v827_v9 }
 0x288   :  { %v1676_v16 = vpop.eup %1675  ;;  %v905_v20 = vmul.f32 1.442695, %v884_v19 }
 0x289   :  { %v832_v53 = vpop.permute.xlu1 %831  ;;  %931 = vadd.xlane.f32.xlu0 %v1676_v16 }
 0x28a   :  { %1681 = vpow2.f32 %v905_v20  ;;  %v885_v42 = vsub.f32 %v2302_v3, %v832_v53 }
 0x28c   :  { %v1678_v2 = vpop.eup %1677  ;;  %v907_v45 = vmul.f32 1.442695, %v885_v42 }
 0x28d   :  { %933 = vadd.xlane.f32.xlu1 %v1678_v2  ;;  %v837_v59 = vpop.permute.xlu0 %836 }
 0x28e   :  { %1683 = vpow2.f32 %v907_v45  ;;  %v886_v51 = vsub.f32 %v2342_v18, %v837_v59 }
 0x290   :  { %v1680_v47 = vpop.eup %1679  ;;  %v909_v28 = vmul.f32 1.442695, %v886_v51 }
 0x291   :  { %v842_v44 = vpop.permute.xlu1 %841  ;;  %935 = vadd.xlane.f32.xlu0 %v1680_v47  ;;  %v847_v25 = vpop.permute.xlu0 %846 }
 0x292   :  { %1685 = vpow2.f32 %v909_v28  ;;  %v887_v56 = vsub.f32 %v2349_v38, %v842_v44  ;;  %v888_v49 = vsub.f32 %v2353_v12, %v847_v25 }
 0x294   :  { %v1682_v60 = vpop.eup %1681  ;;  %v911_v63 = vmul.f32 1.442695, %v887_v56  ;;  %v913_v3 = vmul.f32 1.442695, %v888_v49 }
 0x295   :  { %v852_v17 = vpop.permute.xlu1 %851  ;;  %937 = vadd.xlane.f32.xlu1 %v1682_v60  ;;  %v857_v15 = vpop.permute.xlu0 %856 }
 0x296   :  { %1687 = vpow2.f32 %v911_v63  ;;  %v889_v9 = vsub.f32 %v2361_v27, %v852_v17  ;;  %v890_v18 = vsub.f32 %v2365_v37, %v857_v15  ;;  %v1844_v17 = vld [vmem:[#allocation8 + $0x40] sm:$0xff] }
 0x297   :  { %1689 = vpow2.f32 %v913_v3  ;;  %v1843_v3 = vld [vmem:[#allocation6 + $0x40] sm:$0xff] }
 0x298   :  { %v1684_v19 = vpop.eup %1683  ;;  %v915_v16 = vmul.f32 1.442695, %v889_v9  ;;  %v917_v20 = vmul.f32 1.442695, %v890_v18  ;;  %v1020_v15 = vmul.f32 %v1844_v17, %v1843_v3  ;;  %v1845_v18 = vld [vmem:[#allocation6 + $0x48] sm:$0xff] }
 0x299   :  { %v862_v53 = vpop.permute.xlu1 %861  ;;  %939 = vadd.xlane.f32.xlu0 %v1684_v19  ;;  %v867_v38 = vpop.permute.xlu0 %866  ;;  %v1021_v19 = vmul.f32 %v1845_v18, %v2604_v23  ;;  %v1155_v23 = vand.u32 2147483648, %v2590_v29 }
 0x29a   :  { %1691 = vpow2.f32 %v915_v16  ;;  %v891_v12 = vsub.f32 %v2373_v30, %v862_v53  ;;  %v892_v42 = vsub.f32 %v2377_v46, %v867_v38  ;;  %v1846_v53 = vld [vmem:[#allocation6 + $0x50] sm:$0xff] }
 0x29b   :  { %1693 = vpow2.f32 %v917_v20  ;;  %v1141_v20 = vand.u32 2147483648, %v2584_v11  ;;  %v1847_v38 = vld [vmem:[#allocation8 + $0x50] sm:$0xff] }
 0x29c   :  { %v1686_v2 = vpop.eup %1685  ;;  %v919_v45 = vmul.f32 1.442695, %v891_v12  ;;  %v921_v59 = vmul.f32 1.442695, %v892_v42  ;;  %v1022_v12 = vmul.f32 %v1847_v38, %v1846_v53 }
 0x29d   :  { %v872_v51 = vpop.permute.xlu1 %871  ;;  %941 = vadd.xlane.f32.xlu1 %v1686_v2  ;;  %v877_v27 = vpop.permute.xlu0 %876 }
 0x29e   :  { %1695 = vpow2.f32 %v919_v45  ;;  %v893_v37 = vsub.f32 %v2384_v32, %v872_v51  ;;  %v894_v47 = vsub.f32 %v2388_v35, %v877_v27  ;;  %v1848_v45 = vld [vmem:[#allocation6 + $0x58] sm:$0xff]  ;;  %v1849_v51 = vld [vmem:[#allocation6 + $0x60] sm:$0xff] }
 0x29f   :  { %1697 = vpow2.f32 %v921_v59  ;;  %v1023_v59 = vmul.f32 %v1848_v45, %v2608_v50  ;;  %v1850_v27 = vld [vmem:[#allocation8 + $0x60] sm:$0xff]  ;;  %v1852_v50 = vld [vmem:[#allocation6 + $0x70] sm:$0xff] }
 0x2a0   :  { %v1688_v28 = vpop.eup %1687  ;;  %v923_v44 = vmul.f32 1.442695, %v893_v37  ;;  %v925_v25 = vmul.f32 1.442695, %v894_v47  ;;  %1699 = vrsqrt.f32 %v2584_v11  ;;  %v1024_v37 = vmul.f32 %v1850_v27, %v1849_v51  ;;  %v1221_v51 = vld [vmem:[#allocation4 + $0x8] sm:$0xff] }
 0x2a1   :  { %v1690_v56 = vpop.eup %1689  ;;  %943 = vadd.xlane.f32.xlu0 %v1688_v28 }
 0x2a2   :  { %1701 = vpow2.f32 %v923_v44  ;;  %945 = vadd.xlane.f32.xlu1 %v1690_v56 }
 0x2a3   :  { %1703 = vpow2.f32 %v925_v25  ;;  %v1224_v25 = vld [vmem:[#allocation4 + $0x20] sm:$0xff] }
 0x2a4   :  { %v1692_v30 = vpop.eup %1691  ;;  %1705 = vrsqrt.f32 %v2590_v29 }
 0x2a5   :  { %v1694_v46 = vpop.eup %1693  ;;  %947 = vadd.xlane.f32.xlu0 %v1692_v30  ;;  %v1853_v30 = vld [vmem:[#allocation8 + $0x70] sm:$0xff]  ;;  %1707 = vrsqrt.f32 %v2410_v0 }
 0x2a6   :  { %949 = vadd.xlane.f32.xlu1 %v1694_v46  ;;  %v1026_v46 = vmul.f32 %v1853_v30, %v1852_v50  ;;  %1709 = vrsqrt.f32 %v2621_v6  ;;  %v1225_v30 = vld [vmem:[#allocation4 + $0x28] sm:$0xff] }
 0x2a8   :  { %v1696_v32 = vpop.eup %1695 }
 0x2a9   :  { %v1698_v49 = vpop.eup %1697  ;;  %951 = vadd.xlane.f32.xlu0 %v1696_v32 }
 0x2aa   :  { %953 = vadd.xlane.f32.xlu1 %v1698_v49  ;;  %v1700_v35 = vpop.eup %1699  ;;  %v1854_v49 = vld [vmem:[#allocation6 + $0x78] sm:$0xff] }
 0x2ab   :  { %v1137_v9 = vmul.f32 %v1700_v35, %v2584_v11  ;;  %v1027_v35 = vmul.f32 %v1854_v49, %v2616_v4  ;;  %v1120_v4 = vand.u32 2147483648, %v2410_v0 }
 0x2ac   :  { %v1702_v60 = vpop.eup %1701 }
 0x2ad   :  { %v1704_v63 = vpop.eup %1703  ;;  %955 = vadd.xlane.f32.xlu0 %v1702_v60  ;;  %v1139_v42 = vsel %vm1138_vm8, %v2584_v11, %v1137_v9  ;;  %v1851_v11 = vld [vmem:[#allocation6 + $0x68] sm:$0xff]  ;;  %v1226_v60 = vld [vmem:[#allocation4 + $0x30] sm:$0xff]  ;;  %vm1182_vm8 = vcmp.eq.f32.partialorder %v2596_v40, 0.0 }
 0x2ae   :  { %957 = vadd.xlane.f32.xlu1 %v1704_v63  ;;  %v1706_v16 = vpop.eup %1705  ;;  %v1142_v47 = vsel %vm1140_vm9, %v1141_v20, %v1139_v42  ;;  %v1025_v44 = vmul.f32 %v1851_v11, %v2612_v33 }
 0x2af   :  { %v1151_v2 = vmul.f32 %v1706_v16, %v2590_v29  ;;  %v1240_v56 = vmul.f32 %v1224_v25, %v1142_v47  ;;  %v1708_v3 = vpop.eup %1707 }
 0x2b0   :  { %v1116_v17 = vmul.f32 %v1708_v3, %v2410_v0  ;;  %v1227_v3 = vld [vmem:[#allocation4 + $0x38] sm:$0xff] }
 0x2b1   :  { %1044 = vadd.xlane.f32.xlu0 %v1020_v15  ;;  %v1153_v28 = vsel %vm1152_vm10, %v2590_v29, %v1151_v2  ;;  %v1256_v63 = vmax.f32 %v1240_v56, 5e-10  ;;  %v1710_v15 = vpop.eup %1709 }
 0x2b2   :  { %1046 = vadd.xlane.f32.xlu1 %v1021_v19  ;;  %v1156_v32 = vsel %vm1154_vm11, %v1155_v23, %v1153_v28  ;;  %v1118_v19 = vsel %vm1117_vm12, %v2410_v0, %v1116_v17  ;;  %v1130_v16 = vmul.f32 %v1710_v15, %v2621_v6 }
 0x2b3   :  { %v1242_v29 = vmul.f32 %v1226_v60, %v1156_v32  ;;  %1711 = vrcp.f32 %v1256_v63  ;;  %v1121_v2 = vsel %vm1119_vm13, %v1120_v4, %v1118_v19 }
 0x2b4   :  { %1713 = vrsqrt.f32 %v2623_v14  ;;  %v1132_v45 = vsel %vm1131_vm14, %v2621_v6, %v1130_v16  ;;  %v1237_v27 = vmul.f32 %v1221_v51, %v1121_v2  ;;  %v2966_v51 = vsub.f32 %v2421_v5, %v2429_v7 }
 0x2b5   :  { %1048 = vadd.xlane.f32.xlu0 %v1022_v12  ;;  %v1258_v33 = vmax.f32 %v1242_v29, 5e-10  ;;  %v1134_v12 = vand.u32 2147483648, %v2621_v6  ;;  %v1223_v6 = vld [vmem:[#allocation4 + $0x18] sm:$0xff]  ;;  %v2970_v5 = vsub.f32 %v2461_v41, %v2469_v36 }
 0x2b6   :  { %1050 = vadd.xlane.f32.xlu1 %v1023_v59 }
 0x2b7   :  { %1715 = vrcp.f32 %v1258_v33  ;;  %v1135_v47 = vsel %vm1133_vm15, %v1134_v12, %v1132_v45  ;;  %v761_v7 = vmul.f32 1.442695, %v2970_v5 }
 0x2b8   :  { %v1239_v25 = vmul.f32 %v1223_v6, %v1135_v47 }
 0x2b9   :  { %1052 = vadd.xlane.f32.xlu0 %v1024_v37  ;;  %v1148_v37 = vand.u32 2147483648, %v2623_v14 }
 0x2ba   :  { %1054 = vadd.xlane.f32.xlu1 %v1025_v44  ;;  %v1253_v44 = vmax.f32 %v1237_v27, 5e-10  ;;  %v753_v27 = vmul.f32 1.442695, %v2966_v51 }
 0x2bd   :  { %1056 = vadd.xlane.f32.xlu0 %v1026_v46  ;;  %v1712_v9 = vpop.eup %1711  ;;  %v1255_v46 = vmax.f32 %v1239_v25, 5e-10  ;;  %v719_v25 = vld [vmem:[#allocation3] sm:$0xff] }
 0x2be   :  { %1058 = vadd.xlane.f32.xlu1 %v1027_v35  ;;  %v1714_v53 = vpop.eup %1713 }
 0x2bf   :  { %v1144_v59 = vmul.f32 %v1714_v53, %v2623_v14 }
 0x2c1   :  { %v1716_v38 = vpop.eup %1715  ;;  %v1146_v28 = vsel %vm1145_vm1, %v2623_v14, %v1144_v59 }
 0x2c2   :  { %v1149_v56 = vsel %vm1147_vm2, %v1148_v37, %v1146_v28  ;;  %v2967_v37 = vsub.f32 %v2431_v10, %v2439_v8  ;;  %v2968_v28 = vsub.f32 %v2441_v13, %v2449_v21  ;;  %v2971_v10 = vsub.f32 %v2471_v43, %v2479_v48 }
 0x2c3   :  { %v1241_v32 = vmul.f32 %v1225_v30, %v1149_v56  ;;  %v2972_v13 = vsub.f32 %v2481_v26, %v2489_v57  ;;  %v720_v30 = vld [vmem:[#allocation3 + $0x8] sm:$0xff]  ;;  %v2974_v43 = vsub.f32 %v2493_v58, %v2505_v24  ;;  %v2975_v26 = vsub.f32 %v2507_v31, %v2523_v39 }
 0x2c4   :  { %v755_v47 = vmul.f32 1.442695, %v2967_v37  ;;  %v757_v6 = vmul.f32 1.442695, %v2968_v28  ;;  %v763_v8 = vmul.f32 1.442695, %v2971_v10 }
 0x2c5   :  { %v1257_v29 = vmax.f32 %v1241_v32, 5e-10  ;;  %v765_v21 = vmul.f32 1.442695, %v2972_v13  ;;  %v767_v48 = vmul.f32 1.442695, %v2974_v43 }
 0x2c6   :  { %v773_v57 = vmul.f32 1.442695, %v2975_v26  ;;  %v2986_v28 = vld [vmem:[#allocation19_spill] sm:$0xff]  ;;  %v1183_v10 = vand.u32 2147483648, %v2596_v40 }
 0x2c7   :  { %v726_v26 = vld [vmem:[#allocation3 + $0x38] sm:$0xff] }
 0x2ca   :  { %v1037_v18 = vpop.xlane.xlu0 %1036 }
 0x2cb   :  { %v1288_v20 = vmul.f32 %v1712_v9, %v1037_v18 }
 0x2cd   :  { %1304 = vst.msk [vmem:[#allocation5 + $0x20] sm:$0xff] %vm254_vm0, %v1288_v20 }
 0x2ce   :  { %v1041_v42 = vpop.xlane.xlu0 %1040 }
 0x2cf   :  { %v1290_v0 = vmul.f32 %v1716_v38, %v1041_v42  ;;  %v1091_v23 = vpop.xlane.xlu1 %1090 }
 0x2d0   :  { %1717 = vrsqrt.f32 %v1091_v23  ;;  %vm1159_vm3 = vcmp.eq.f32.partialorder %v1091_v23, inf  ;;  %v1162_v35 = vand.u32 2147483648, %v1091_v23  ;;  %vm1161_vm4 = vcmp.eq.f32.partialorder %v1091_v23, 0.0 }
 0x2d1   :  { %1306 = vst.msk [vmem:[#allocation5 + $0x30] sm:$0xff] %vm254_vm0, %v1290_v0  ;;  %1719 = vrcp.f32 %v1253_v44  ;;  %v2965_v0 = vsub.f32 %v2414_v1, %v2419_v54  ;;  %v2969_v1 = vsub.f32 %v2451_v22, %v2459_v34  ;;  %v2973_v34 = vsub.f32 %v2491_v52, %v2502_v55  ;;  %v721_v55 = vld [vmem:[#allocation3 + $0x10] sm:$0xff] }
 0x2d2   :  { %1721 = vrcp.f32 %v1255_v46 }
 0x2d3   :  { %v2677_v11 = vpop.xlane.xlu1 %1094  ;;  %1723 = vrcp.f32 %v1257_v29  ;;  %v759_v54 = vmul.f32 1.442695, %v2969_v1  ;;  %v769_v41 = vmul.f32 1.442695, %v2973_v34  ;;  %v1169_v1 = vand.u32 2147483648, %v2593_v62 }
 0x2d4   :  { %vm1173_vm9 = vcmp.eq.f32.partialorder %v2677_v11, inf  ;;  %vm1175_vm12 = vcmp.eq.f32.partialorder %v2677_v11, 0.0 }
 0x2d7   :  { %v2679_v50 = vpop.xlane.xlu1 %1098 }
 0x2d8   :  { %vm1187_vm13 = vcmp.eq.f32.partialorder %v2679_v50, inf  ;;  %vm1189_vm1 = vcmp.eq.f32.partialorder %v2679_v50, 0.0 }
 0x2da   :  { %v1718_v49 = vpop.eup %1717 }
 0x2db   :  { %v1158_v60 = vmul.f32 %v1718_v49, %v1091_v23  ;;  %v2681_v63 = vpop.xlane.xlu1 %1102  ;;  %v1720_v4 = vpop.eup %1719 }
 0x2dc   :  { %v1722_v16 = vpop.eup %1721  ;;  %vm1201_vm2 = vcmp.eq.f32.partialorder %v2681_v63, inf }
 0x2dd   :  { %v1160_v14 = vsel %vm1159_vm3, %v1091_v23, %v1158_v60  ;;  %v1724_v38 = vpop.eup %1723  ;;  %v751_v23 = vmul.f32 1.442695, %v2965_v0  ;;  %vm1203_vm3 = vcmp.eq.f32.partialorder %v2681_v63, 0.0 }
 0x2de   :  { %v1163_v33 = vsel %vm1161_vm4, %v1162_v35, %v1160_v14  ;;  %v2976_v35 = vld [vmem:[#allocation12_spill] sm:$0xff] }
 0x2df   :  { %v2683_v17 = vpop.xlane.xlu1 %1106  ;;  %v1243_v15 = vmul.f32 %v1227_v3, %v1163_v33  ;;  %v2977_v60 = vsub.f32 %v2509_v61, %v2976_v35  ;;  %v2978_v33 = vld [vmem:[#allocation13_spill] sm:$0xff]  ;;  %v2979_v3 = vld [vmem:[#allocation15_spill] sm:$0xff] }
 0x2e0   :  { %vm1215_vm4 = vcmp.eq.f32.partialorder %v2683_v17, inf }
 0x2e1   :  { %v1259_v9 = vmax.f32 %v1243_v15, 5e-10  ;;  %v771_v58 = vmul.f32 1.442695, %v2977_v60  ;;  %v2980_v15 = vsub.f32 %v2978_v33, %v2979_v3 }
 0x2e3   :  { %v1031_v18 = vpop.xlane.xlu1 %1030  ;;  %1725 = vrcp.f32 %v1259_v9  ;;  %v777_v9 = vmul.f32 1.442695, %v2980_v15 }
 0x2e4   :  { %v1285_v19 = vmul.f32 %v1720_v4, %v1031_v18  ;;  %1727 = vpow2.f32 %v751_v23  ;;  %v2981_v4 = vld [vmem:[#allocation21_spill] sm:$0xff] }
 0x2e5   :  { %1729 = vpow2.f32 %v753_v27  ;;  %v723_v27 = vld [vmem:[#allocation3 + $0x20] sm:$0xff]  ;;  %vm1194_vm10 = vcmp.eq.f32.partialorder %v2981_v4, inf  ;;  %vm1196_vm11 = vcmp.eq.f32.partialorder %v2981_v4, 0.0 }
 0x2e6   :  { %1301 = vst.msk [vmem:[#allocation5 + $0x8] sm:$0xff] %vm254_vm0, %v1285_v19  ;;  %1731 = vpow2.f32 %v755_v47  ;;  %v722_v19 = vld [vmem:[#allocation3 + $0x18] sm:$0xff]  ;;  %v2985_v47 = vld [vmem:[#allocation17_spill] sm:$0xff] }
 0x2e7   :  { %v1035_v20 = vpop.xlane.xlu1 %1034  ;;  %1733 = vpow2.f32 %v757_v6  ;;  %v2987_v6 = vsub.f32 %v2985_v47, %v2986_v28 }
 0x2e8   :  { %v1287_v53 = vmul.f32 %v1722_v16, %v1035_v20  ;;  %1735 = vrsqrt.f32 %v2593_v62 }
 0x2e9   :  { %1737 = vrsqrt.f32 %v2596_v40 }
 0x2ea   :  { %1303 = vst.msk [vmem:[#allocation5 + $0x18] sm:$0xff] %vm254_vm0, %v1287_v53  ;;  %1739 = vpow2.f32 %v759_v54  ;;  %v2988_v54 = vld [vmem:[#allocation22_spill] sm:$0xff] }
 0x2eb   :  { %v1039_v12 = vpop.xlane.xlu1 %1038  ;;  %1741 = vpow2.f32 %v761_v7  ;;  %vm1208_vm14 = vcmp.eq.f32.partialorder %v2988_v54, inf  ;;  %vm1210_vm15 = vcmp.eq.f32.partialorder %v2988_v54, 0.0 }
 0x2ec   :  { %v1289_v42 = vmul.f32 %v1724_v38, %v1039_v12  ;;  %1743 = vpow2.f32 %v763_v8 }
 0x2ed   :  { %v1726_v2 = vpop.eup %1725  ;;  %1745 = vpow2.f32 %v765_v21 }
 0x2ee   :  { %1305 = vst.msk [vmem:[#allocation5 + $0x28] sm:$0xff] %vm254_vm0, %v1289_v42  ;;  %v1728_v44 = vpop.eup %1727  ;;  %1747 = vpow2.f32 %v769_v41  ;;  %v2989_v41 = vld [vmem:[#allocation18_spill] sm:$0xff] }
 0x2ef   :  { %v1043_v45 = vpop.xlane.xlu1 %1042  ;;  %v783_v56 = vmul.f32 %v1728_v44, %v719_v25  ;;  %v1730_v22 = vpop.eup %1729  ;;  %1749 = vpow2.f32 %v767_v48  ;;  %v781_v44 = vmul.f32 1.442695, %v2987_v6 }
 0x2f0   :  { %v1291_v59 = vmul.f32 %v1726_v2, %v1043_v45  ;;  %v784_v32 = vmul.f32 %v1730_v22, %v720_v30  ;;  %v1732_v49 = vpop.eup %1731  ;;  %1751 = vrsqrt.f32 %v2677_v11  ;;  %v2982_v45 = vld [vmem:[#allocation14_spill] sm:$0xff]  ;;  %v724_v22 = vld [vmem:[#allocation3 + $0x28] sm:$0xff] }
 0x2f1   :  { %v1734_v14 = vpop.eup %1733  ;;  %1753 = vpow2.f32 %v773_v57  ;;  %v785_v31 = vmul.f32 %v1732_v49, %v721_v55  ;;  %v728_v49 = vld [vmem:[#allocation3 + $0x48] sm:$0xff] }
 0x2f2   :  { %1307 = vst.msk [vmem:[#allocation5 + $0x38] sm:$0xff] %vm254_vm0, %v1291_v59  ;;  %v1736_v29 = vpop.eup %1735  ;;  %1755 = vrsqrt.f32 %v2981_v4  ;;  %v786_v42 = vmul.f32 %v1734_v14, %v722_v19  ;;  %v2983_v59 = vld [vmem:[#allocation16_spill] sm:$0xff] }
 0x2f3   :  { %v1738_v39 = vpop.eup %1737  ;;  %1757 = vpow2.f32 %v771_v58  ;;  %v1165_v20 = vmul.f32 %v1736_v29, %v2593_v62  ;;  %v2984_v0 = vsub.f32 %v2982_v45, %v2983_v59  ;;  %v727_v58 = vld [vmem:[#allocation3 + $0x40] sm:$0xff] }
 0x2f4   :  { %v1740_v16 = vpop.eup %1739  ;;  %1759 = vrsqrt.f32 %v2679_v50  ;;  %v1179_v12 = vmul.f32 %v1738_v39, %v2596_v40  ;;  %v1319_v45 = vld [vmem:[#allocation2] sm:$0xff] }
 0x2f5   :  { %v1742_v38 = vpop.eup %1741  ;;  %v775_v23 = vmul.f32 1.442695, %v2984_v0  ;;  %v1167_v7 = vsel %vm1166_vm5, %v2593_v62, %v1165_v20  ;;  %v1228_v62 = vld [vmem:[#allocation4 + $0x40] sm:$0xff]  ;;  %vm1217_vm5 = vcmp.eq.f32.partialorder %v2683_v17, 0.0 }
 0x2f6   :  { %v1744_v2 = vpop.eup %1743  ;;  %v1181_v21 = vsel %vm1180_vm6, %v2596_v40, %v1179_v12  ;;  %v788_v60 = vmul.f32 %v1742_v38, %v724_v22  ;;  %v1176_v38 = vand.u32 2147483648, %v2677_v11  ;;  %v1320_v22 = vld [vmem:[#allocation2 + $0x8] sm:$0xff] }
 0x2f7   :  { %v1746_v37 = vpop.eup %1745 }
 0x2f8   :  { %v1748_v5 = vpop.eup %1747  ;;  %v2771_v39 = vmul.f32 %v1746_v37, %v726_v26  ;;  %v1400_v26 = vld [vmem:[#allocation5 + $0x8] sm:$0xff] }
 0x2f9   :  { %v1750_v13 = vpop.eup %1749  ;;  %v2774_v15 = vmul.f32 %v1748_v5, %v728_v49 }
 0x2fa   :  { %v1752_v34 = vpop.eup %1751 }
 0x2fb   :  { %v2760_v57 = vpop.eup %1753  ;;  %v1172_v29 = vmul.f32 %v1752_v34, %v2677_v11 }
 0x2fc   :  { %v1756_v55 = vpop.eup %1755 }
 0x2fd   :  { %v2767_v14 = vpop.eup %1757  ;;  %v1193_v19 = vmul.f32 %v1756_v55, %v2981_v4  ;;  %v1174_v59 = vsel %vm1173_vm9, %v2677_v11, %v1172_v29 }
 0x2fe   :  { %v1760_v33 = vpop.eup %1759 }
 0x2ff   :  { %v1186_v0 = vmul.f32 %v1760_v33, %v2679_v50  ;;  %v1195_v6 = vsel %vm1194_vm10, %v2981_v4, %v1193_v19  ;;  %v1231_v19 = vld [vmem:[#allocation4 + $0x58] sm:$0xff] }
 0x301   :  { %v1188_v34 = vsel %vm1187_vm13, %v2679_v50, %v1186_v0 }
 0x30e   :  { %v928_v36 = vpop.xlane.xlu0 %927 }
 0x30f   :  { %v959_v46 = vadd.f32 %v928_v36, %v783_v56  ;;  %v787_v56 = vmul.f32 %v1740_v16, %v723_v27  ;;  %v2990_v36 = vld [vmem:[#allocation20_spill] sm:$0xff]  ;;  %v2777_v16 = vmul.f32 %v1750_v13, %v727_v58 }
 0x310   :  { %v2991_v30 = vsub.f32 %v2989_v41, %v2990_v36 }
 0x311   :  { %976 = vst.msk [vmem:[#allocation3] sm:$0xff] %vm254_vm0, %v959_v46  ;;  %v725_v46 = vld [vmem:[#allocation3 + $0x30] sm:$0xff] }
 0x312   :  { %v930_v52 = vpop.xlane.xlu1 %929  ;;  %v779_v43 = vmul.f32 1.442695, %v2991_v30 }
 0x313   :  { %v960_v24 = vadd.f32 %v930_v52, %v784_v32  ;;  %v1170_v52 = vsel %vm1168_vm7, %v1169_v1, %v1167_v7  ;;  %v1190_v7 = vand.u32 2147483648, %v2679_v50 }
 0x314   :  { %v1244_v40 = vmul.f32 %v1228_v62, %v1170_v52  ;;  %v1211_v62 = vand.u32 2147483648, %v2988_v54 }
 0x315   :  { %977 = vst.msk [vmem:[#allocation3 + $0x8] sm:$0xff] %vm254_vm0, %v960_v24  ;;  %v1184_v24 = vsel %vm1182_vm8, %v1183_v10, %v1181_v21  ;;  %v1177_v21 = vsel %vm1175_vm12, %v1176_v38, %v1174_v59  ;;  %v1191_v29 = vsel %vm1189_vm1, %v1190_v7, %v1188_v34  ;;  %v1401_v38 = vld [vmem:[#allocation5 + $0x10] sm:$0xff] }
 0x316   :  { %v932_v18 = vpop.xlane.xlu0 %931  ;;  %v1260_v47 = vmax.f32 %v1244_v40, 5e-10 }
 0x317   :  { %v961_v61 = vadd.f32 %v932_v18, %v785_v31  ;;  %v789_v31 = vmul.f32 %v1744_v2, %v725_v46 }
 0x318   :  { %v1335_v53 = vld [vmem:[#allocation3] sm:$0xff] }
 0x319   :  { %1761 = vlog2.f32 %v1335_v53  ;;  %978 = vst.msk [vmem:[#allocation3 + $0x10] sm:$0xff] %vm254_vm0, %v961_v61 }
 0x31a   :  { %1763 = vpow2.f32 %v777_v9  ;;  %v934_v51 = vpop.xlane.xlu1 %933  ;;  %v1230_v9 = vld [vmem:[#allocation4 + $0x50] sm:$0xff] }
 0x31b   :  { %1765 = vrsqrt.f32 %v2988_v54  ;;  %v962_v25 = vadd.f32 %v934_v51, %v786_v42  ;;  %v1246_v20 = vmul.f32 %v1230_v9, %v1184_v24  ;;  %v1197_v51 = vand.u32 2147483648, %v2981_v4  ;;  %v1232_v4 = vld [vmem:[#allocation4 + $0x60] sm:$0xff]  ;;  %v730_v9 = vld [vmem:[#allocation3 + $0x58] sm:$0xff] }
 0x31c   :  { %1767 = vrsqrt.f32 %v2681_v63  ;;  %v1336_v8 = vld [vmem:[#allocation3 + $0x8] sm:$0xff] }
 0x31d   :  { %1769 = vlog2.f32 %v1336_v8  ;;  %979 = vst.msk [vmem:[#allocation3 + $0x18] sm:$0xff] %vm254_vm0, %v962_v25  ;;  %v1262_v25 = vmax.f32 %v1246_v20, 5e-10  ;;  %v1198_v52 = vsel %vm1196_vm11, %v1197_v51, %v1195_v6 }
 0x31e   :  { %1771 = vpow2.f32 %v775_v23  ;;  %v936_v48 = vpop.xlane.xlu0 %935 }
 0x31f   :  { %1773 = vpow2.f32 %v781_v44  ;;  %v963_v32 = vadd.f32 %v936_v48, %v787_v56  ;;  %v1399_v44 = vld [vmem:[#allocation5] sm:$0xff]  ;;  %v1229_v48 = vld [vmem:[#allocation4 + $0x48] sm:$0xff] }
 0x320   :  { %1775 = vrsqrt.f32 %v2683_v17  ;;  %v1337_v35 = vld [vmem:[#allocation3 + $0x10] sm:$0xff]  ;;  %v2817_v49 = vmul.f32 %v1229_v48, %v1177_v21  ;;  %v1323_v48 = vld [vmem:[#allocation2 + $0x20] sm:$0xff] }
 0x321   :  { %1777 = vlog2.f32 %v1337_v35  ;;  %980 = vst.msk [vmem:[#allocation3 + $0x20] sm:$0xff] %vm254_vm0, %v963_v32  ;;  %v1204_v35 = vand.u32 2147483648, %v2681_v63 }
 0x322   :  { %1779 = vpow2.f32 %v779_v43  ;;  %v938_v3 = vpop.xlane.xlu1 %937 }
 0x323   :  { %v1762_v18 = vpop.eup %1761  ;;  %v964_v61 = vadd.f32 %v938_v3, %v788_v60 }
 0x324   :  { %v2779_v53 = vpop.eup %1763  ;;  %v1352_v12 = vmul.f32 0.6931472, %v1762_v18  ;;  %v1338_v42 = vld [vmem:[#allocation3 + $0x18] sm:$0xff]  ;;  %v729_v18 = vld [vmem:[#allocation3 + $0x50] sm:$0xff] }
 0x325   :  { %v1766_v2 = vpop.eup %1765  ;;  %1781 = vlog2.f32 %v1338_v42  ;;  %981 = vst.msk [vmem:[#allocation3 + $0x28] sm:$0xff] %vm254_vm0, %v964_v61  ;;  %v1248_v61 = vmul.f32 %v1232_v4, %v1198_v52  ;;  %v733_v52 = vld [vmem:[#allocation3 + $0x70] sm:$0xff] }
 0x326   :  { %v1768_v23 = vpop.eup %1767  ;;  %v1383_v27 = vadd.f32 %v1352_v12, %v1319_v45  ;;  %v940_v37 = vpop.xlane.xlu0 %939  ;;  %v1207_v30 = vmul.f32 %v1766_v2, %v2988_v54  ;;  %v1261_v2 = vmax.f32 %v2817_v49, 5e-10  ;;  %v1247_v45 = vmul.f32 %v1231_v19, %v1191_v29 }
 0x327   :  { %v1770_v28 = vpop.eup %1769  ;;  %v965_v1 = vadd.f32 %v940_v37, %v789_v31  ;;  %v1200_v41 = vmul.f32 %v1768_v23, %v2681_v63  ;;  %v1321_v31 = vld [vmem:[#allocation2 + $0x10] sm:$0xff]  ;;  %v1322_v37 = vld [vmem:[#allocation2 + $0x18] sm:$0xff] }
 0x328   :  { %v2796_v5 = vpop.eup %1771  ;;  %v1415_v10 = vsub.f32 %v1383_v27, %v1399_v44  ;;  %v1354_v8 = vmul.f32 0.6931472, %v1770_v28  ;;  %v1339_v13 = vld [vmem:[#allocation3 + $0x20] sm:$0xff]  ;;  %v1209_v33 = vsel %vm1208_vm14, %v2988_v54, %v1207_v30  ;;  %v794_v28 = vmul.f32 %v2760_v57, %v730_v9 }
 0x329   :  { %v2802_v56 = vpop.eup %1773  ;;  %1783 = vlog2.f32 %v1339_v13  ;;  %982 = vst.msk [vmem:[#allocation3 + $0x30] sm:$0xff] %vm254_vm0, %v965_v1  ;;  %v731_v44 = vld [vmem:[#allocation3 + $0x60] sm:$0xff]  ;;  %v1233_v1 = vld [vmem:[#allocation4 + $0x68] sm:$0xff]  ;;  %v1264_v57 = vmax.f32 %v1248_v61, 5e-10 }
 0x32a   :  { %v1776_v36 = vpop.eup %1775  ;;  %1431 = vst.msk [vmem:[%s2942_s3] sm:$0xff] %vm254_vm0, %v1415_v10  ;;  %v1384_v11 = vadd.f32 %v1354_v8, %v1320_v22  ;;  %v942_v43 = vpop.xlane.xlu1 %941  ;;  %1785 = vrcp.f32 %v1260_v47  ;;  %v1218_v47 = vand.u32 2147483648, %v2683_v17  ;;  %v732_v8 = vld [vmem:[#allocation3 + $0x68] sm:$0xff]  ;;  %v1263_v13 = vmax.f32 %v1247_v45, 5e-10 }
 0x32b   :  { %v1778_v46 = vpop.eup %1777  ;;  %v966_v32 = vadd.f32 %v942_v43, %v2771_v39  ;;  %1787 = vrcp.f32 %v1262_v25  ;;  %v1202_v39 = vsel %vm1201_vm2, %v2681_v63, %v1200_v41  ;;  %v1214_v50 = vmul.f32 %v1776_v36, %v2683_v17 }
 0x32c   :  { %v2821_v55 = vpop.eup %1779  ;;  %v1416_v60 = vsub.f32 %v1384_v11, %v1400_v26  ;;  %v1356_v58 = vmul.f32 0.6931472, %v1778_v46  ;;  %v1340_v24 = vld [vmem:[#allocation3 + $0x28] sm:$0xff]  ;;  %v1205_v27 = vsel %vm1203_vm3, %v1204_v35, %v1202_v39  ;;  %v1212_v22 = vsel %vm1210_vm15, %v1211_v62, %v1209_v33  ;;  %v1234_v35 = vld [vmem:[#allocation4 + $0x70] sm:$0xff] }
 0x32d   :  { %1789 = vlog2.f32 %v1340_v24  ;;  %983 = vst.msk [vmem:[#allocation3 + $0x38] sm:$0xff] %vm254_vm0, %v966_v32  ;;  %v1216_v6 = vsel %vm1215_vm4, %v2683_v17, %v1214_v50  ;;  %v1249_v21 = vmul.f32 %v1233_v1, %v1205_v27  ;;  %v795_v46 = vmul.f32 %v2796_v5, %v731_v44  ;;  %v734_v17 = vld [vmem:[#allocation3 + $0x78] sm:$0xff] }
 0x32e   :  { %1432 = vst.msk [vmem:[%s2942_s3 + $0x8] sm:$0xff] %vm254_vm0, %v1416_v60  ;;  %v1385_v3 = vadd.f32 %v1356_v58, %v1321_v31  ;;  %v944_v40 = vpop.xlane.xlu0 %943  ;;  %v1219_v26 = vsel %vm1217_vm5, %v1218_v47, %v1216_v6  ;;  %v796_v32 = vmul.f32 %v2779_v53, %v732_v8  ;;  %v1403_v58 = vld [vmem:[#allocation5 + $0x20] sm:$0xff]  ;;  %v1235_v31 = vld [vmem:[#allocation4 + $0x78] sm:$0xff]  ;;  %v1250_v62 = vmul.f32 %v1234_v35, %v1212_v22 }
 0x32f   :  { %v1782_v20 = vpop.eup %1781  ;;  %v946_v12 = vpop.xlane.xlu1 %945  ;;  %v967_v42 = vadd.f32 %v944_v40, %v2777_v16  ;;  %v793_v16 = vmul.f32 %v2767_v14, %v729_v18  ;;  %v1402_v14 = vld [vmem:[#allocation5 + $0x18] sm:$0xff]  ;;  %v1265_v29 = vmax.f32 %v1249_v21, 5e-10  ;;  %v1324_v40 = vld [vmem:[#allocation2 + $0x28] sm:$0xff]  ;;  %v797_v9 = vmul.f32 %v2821_v55, %v733_v52 }
 0x330   :  { %v1417_v59 = vsub.f32 %v1385_v3, %v1401_v38  ;;  %v1358_v0 = vmul.f32 0.6931472, %v1782_v20  ;;  %v1341_v23 = vld [vmem:[#allocation3 + $0x30] sm:$0xff]  ;;  %v968_v51 = vadd.f32 %v946_v12, %v2774_v15  ;;  %v1251_v3 = vmul.f32 %v1235_v31, %v1219_v26  ;;  %v1404_v38 = vld [vmem:[#allocation5 + $0x28] sm:$0xff]  ;;  %v1406_v22 = vld [vmem:[#allocation5 + $0x38] sm:$0xff] }
 0x331   :  { %1791 = vlog2.f32 %v1341_v23  ;;  %984 = vst.msk [vmem:[#allocation3 + $0x40] sm:$0xff] %vm254_vm0, %v967_v42  ;;  %v798_v19 = vmul.f32 %v2802_v56, %v734_v17  ;;  %v1328_v52 = vld [vmem:[#allocation2 + $0x48] sm:$0xff] }
 0x332   :  { %1433 = vst.msk [vmem:[%s2942_s3 + $0x10] sm:$0xff] %vm254_vm0, %v1417_v59  ;;  %v1386_v63 = vadd.f32 %v1358_v0, %v1322_v37  ;;  %985 = vst.msk [vmem:[#allocation3 + $0x48] sm:$0xff] %vm254_vm0, %v968_v51  ;;  %v948_v15 = vpop.xlane.xlu0 %947  ;;  %1793 = vrcp.f32 %v1261_v2  ;;  %v1266_v2 = vmax.f32 %v1250_v62, 5e-10  ;;  %v1267_v23 = vmax.f32 %v1251_v3, 5e-10 }
 0x333   :  { %v1784_v25 = vpop.eup %1783  ;;  %v950_v7 = vpop.xlane.xlu1 %949  ;;  %v969_v10 = vadd.f32 %v948_v15, %v793_v16  ;;  %v1325_v51 = vld [vmem:[#allocation2 + $0x30] sm:$0xff] }
 0x334   :  { %v2861_v34 = vpop.eup %1785  ;;  %v1418_v41 = vsub.f32 %v1386_v63, %v1402_v14  ;;  %v1360_v36 = vmul.f32 0.6931472, %v1784_v25  ;;  %v1342_v30 = vld [vmem:[#allocation3 + $0x38] sm:$0xff]  ;;  %v970_v11 = vadd.f32 %v950_v7, %v794_v28  ;;  %v1405_v16 = vld [vmem:[#allocation5 + $0x30] sm:$0xff] }
 0x335   :  { %v2863_v43 = vpop.eup %1787  ;;  %1795 = vlog2.f32 %v1342_v30  ;;  %986 = vst.msk [vmem:[#allocation3 + $0x50] sm:$0xff] %vm254_vm0, %v969_v10  ;;  %v1326_v7 = vld [vmem:[#allocation2 + $0x38] sm:$0xff] }
 0x336   :  { %1434 = vst.msk [vmem:[%s2942_s3 + $0x18] sm:$0xff] %vm254_vm0, %v1418_v41  ;;  %v1387_v54 = vadd.f32 %v1360_v36, %v1323_v48  ;;  %987 = vst.msk [vmem:[#allocation3 + $0x58] sm:$0xff] %vm254_vm0, %v970_v11  ;;  %v952_v49 = vpop.xlane.xlu0 %951  ;;  %1797 = vrcp.f32 %v1264_v57 }
 0x337   :  { %v1790_v60 = vpop.eup %1789  ;;  %v954_v5 = vpop.xlane.xlu1 %953  ;;  %v971_v24 = vadd.f32 %v952_v49, %v795_v46  ;;  %1799 = vrcp.f32 %v1263_v13 }
 0x338   :  { %v1419_v39 = vsub.f32 %v1387_v54, %v1403_v58  ;;  %v1362_v4 = vmul.f32 0.6931472, %v1790_v60  ;;  %v1343_v33 = vld [vmem:[#allocation3 + $0x40] sm:$0xff]  ;;  %v972_v50 = vadd.f32 %v954_v5, %v796_v32 }
 0x339   :  { %v1344_v53 = vld [vmem:[#allocation3 + $0x48] sm:$0xff]  ;;  %1801 = vlog2.f32 %v1343_v33  ;;  %988 = vst.msk [vmem:[#allocation3 + $0x60] sm:$0xff] %vm254_vm0, %v971_v24  ;;  %v1327_v54 = vld [vmem:[#allocation2 + $0x40] sm:$0xff] }
 0x33a   :  { %1435 = vst.msk [vmem:[%s2942_s3 + $0x20] sm:$0xff] %vm254_vm0, %v1419_v39  ;;  %v1388_v18 = vadd.f32 %v1362_v4, %v1324_v40  ;;  %1803 = vlog2.f32 %v1344_v53  ;;  %989 = vst.msk [vmem:[#allocation3 + $0x68] sm:$0xff] %vm254_vm0, %v972_v50  ;;  %v956_v61 = vpop.xlane.xlu0 %955  ;;  %v1329_v4 = vld [vmem:[#allocation2 + $0x50] sm:$0xff]  ;;  %v1330_v53 = vld [vmem:[#allocation2 + $0x58] sm:$0xff] }
 0x33b   :  { %v1792_v20 = vpop.eup %1791  ;;  %v958_v12 = vpop.xlane.xlu1 %957  ;;  %v973_v42 = vadd.f32 %v956_v61, %v797_v9  ;;  %1805 = vrcp.f32 %v1265_v29 }
 0x33c   :  { %v1420_v45 = vsub.f32 %v1388_v18, %v1404_v38  ;;  %v1364_v55 = vmul.f32 0.6931472, %v1792_v20  ;;  %v1345_v59 = vld [vmem:[#allocation3 + $0x50] sm:$0xff]  ;;  %v974_v0 = vadd.f32 %v958_v12, %v798_v19  ;;  %v1794_v37 = vpop.eup %1793 }
 0x33d   :  { %v1346_v27 = vld [vmem:[#allocation3 + $0x58] sm:$0xff]  ;;  %1807 = vlog2.f32 %v1345_v59  ;;  %990 = vst.msk [vmem:[#allocation3 + $0x70] sm:$0xff] %vm254_vm0, %v973_v42  ;;  %v1331_v59 = vld [vmem:[#allocation2 + $0x60] sm:$0xff] }
 0x33e   :  { %1436 = vst.msk [vmem:[%s2942_s3 + $0x28] sm:$0xff] %vm254_vm0, %v1420_v45  ;;  %v1389_v56 = vadd.f32 %v1364_v55, %v1325_v51  ;;  %1809 = vlog2.f32 %v1346_v27  ;;  %991 = vst.msk [vmem:[#allocation3 + $0x78] sm:$0xff] %vm254_vm0, %v974_v0  ;;  %v1045_v47 = vpop.xlane.xlu0 %1044  ;;  %v1332_v27 = vld [vmem:[#allocation2 + $0x68] sm:$0xff] }
 0x33f   :  { %v1796_v28 = vpop.eup %1795  ;;  %v1047_v6 = vpop.xlane.xlu1 %1046  ;;  %v1292_v63 = vmul.f32 %v2861_v34, %v1045_v47  ;;  %1811 = vrcp.f32 %v1266_v2 }
 0x340   :  { %v1798_v15 = vpop.eup %1797  ;;  %v1421_v44 = vsub.f32 %v1389_v56, %v1405_v16  ;;  %v1366_v1 = vmul.f32 0.6931472, %v1796_v28  ;;  %v1347_v57 = vld [vmem:[#allocation3 + $0x60] sm:$0xff]  ;;  %v1293_v25 = vmul.f32 %v1794_v37, %v1047_v6  ;;  %1813 = vrcp.f32 %v1267_v23 }
 0x341   :  { %v1800_v14 = vpop.eup %1799  ;;  %v1348_v10 = vld [vmem:[#allocation3 + $0x68] sm:$0xff]  ;;  %1815 = vlog2.f32 %v1347_v57  ;;  %1308 = vst.msk [vmem:[#allocation5 + $0x40] sm:$0xff] %vm254_vm0, %v1292_v63 }
 0x342   :  { %1437 = vst.msk [vmem:[%s2942_s3 + $0x30] sm:$0xff] %vm254_vm0, %v1421_v44  ;;  %v1390_v8 = vadd.f32 %v1366_v1, %v1326_v7  ;;  %1817 = vlog2.f32 %v1348_v10  ;;  %1309 = vst.msk [vmem:[#allocation5 + $0x48] sm:$0xff] %vm254_vm0, %v1293_v25  ;;  %v1049_v13 = vpop.xlane.xlu0 %1048  ;;  %v1334_v25 = vld [vmem:[#allocation2 + $0x78] sm:$0xff] }
 0x343   :  { %v1802_v21 = vpop.eup %1801  ;;  %v1051_v34 = vpop.xlane.xlu1 %1050  ;;  %v1294_v41 = vmul.f32 %v2863_v43, %v1049_v13 }
 0x344   :  { %v1804_v36 = vpop.eup %1803  ;;  %v1422_v30 = vsub.f32 %v1390_v8, %v1406_v22  ;;  %v1368_v11 = vmul.f32 0.6931472, %v1802_v21  ;;  %v1349_v48 = vld [vmem:[#allocation3 + $0x70] sm:$0xff]  ;;  %v1295_v46 = vmul.f32 %v1800_v14, %v1051_v34 }
 0x345   :  { %v1806_v26 = vpop.eup %1805  ;;  %v1370_v32 = vmul.f32 0.6931472, %v1804_v36  ;;  %v1350_v49 = vld [vmem:[#allocation3 + $0x78] sm:$0xff]  ;;  %1819 = vlog2.f32 %v1349_v48  ;;  %1310 = vst.msk [vmem:[#allocation5 + $0x50] sm:$0xff] %vm254_vm0, %v1294_v41 }
 0x346   :  { %1438 = vst.msk [vmem:[%s2942_s3 + $0x38] sm:$0xff] %vm254_vm0, %v1422_v30  ;;  %1821 = vlog2.f32 %v1350_v49  ;;  %v1391_v43 = vadd.f32 %v1368_v11, %v1327_v54  ;;  %1311 = vst.msk [vmem:[#allocation5 + $0x58] sm:$0xff] %vm254_vm0, %v1295_v46  ;;  %v1053_v35 = vpop.xlane.xlu0 %1052 }
 0x347   :  { %v1808_v60 = vpop.eup %1807  ;;  %v1392_v58 = vadd.f32 %v1370_v32, %v1328_v52  ;;  %v1055_v5 = vpop.xlane.xlu1 %1054  ;;  %v1296_v24 = vmul.f32 %v1798_v15, %v1053_v35  ;;  %v1333_v15 = vld [vmem:[#allocation2 + $0x70] sm:$0xff] }
 0x348   :  { %v1810_v17 = vpop.eup %1809  ;;  %v1372_v29 = vmul.f32 0.6931472, %v1808_v60  ;;  %v1407_v31 = vld [vmem:[#allocation5 + $0x40] sm:$0xff]  ;;  %v1297_v62 = vmul.f32 %v1806_v26, %v1055_v5 }
 0x349   :  { %v1812_v39 = vpop.eup %1811  ;;  %v1374_v33 = vmul.f32 0.6931472, %v1810_v17  ;;  %v1408_v50 = vld [vmem:[#allocation5 + $0x48] sm:$0xff]  ;;  %v1423_v3 = vsub.f32 %v1391_v43, %v1407_v31  ;;  %1312 = vst.msk [vmem:[#allocation5 + $0x60] sm:$0xff] %vm254_vm0, %v1296_v24 }
 0x34a   :  { %v1814_v40 = vpop.eup %1813  ;;  %v1424_v9 = vsub.f32 %v1392_v58, %v1408_v50  ;;  %v1393_v18 = vadd.f32 %v1372_v29, %v1329_v4  ;;  %1313 = vst.msk [vmem:[#allocation5 + $0x68] sm:$0xff] %vm254_vm0, %v1297_v62  ;;  %v1057_v19 = vpop.xlane.xlu0 %1056 }
 0x34b   :  { %v1816_v61 = vpop.eup %1815  ;;  %1439 = vst.msk [vmem:[%s2942_s3 + $0x40] sm:$0xff] %vm254_vm0, %v1423_v3  ;;  %v1394_v20 = vadd.f32 %v1374_v33, %v1330_v53  ;;  %v1059_v38 = vpop.xlane.xlu1 %1058  ;;  %v1298_v12 = vmul.f32 %v1812_v39, %v1057_v19 }
 0x34c   :  { %v1818_v42 = vpop.eup %1817  ;;  %v1376_v2 = vmul.f32 0.6931472, %v1816_v61  ;;  %1440 = vst.msk [vmem:[%s2942_s3 + $0x48] sm:$0xff] %vm254_vm0, %v1424_v9  ;;  %v1409_v45 = vld [vmem:[#allocation5 + $0x50] sm:$0xff]  ;;  %v1299_v55 = vmul.f32 %v1814_v40, %v1059_v38 }
 0x34d   :  { %v1378_v0 = vmul.f32 0.6931472, %v1818_v42  ;;  %v1410_v23 = vld [vmem:[#allocation5 + $0x58] sm:$0xff]  ;;  %v1425_v51 = vsub.f32 %v1393_v18, %v1409_v45  ;;  %1314 = vst.msk [vmem:[#allocation5 + $0x70] sm:$0xff] %vm254_vm0, %v1298_v12 }
 0x34e   :  { %v1426_v37 = vsub.f32 %v1394_v20, %v1410_v23  ;;  %v1395_v56 = vadd.f32 %v1376_v2, %v1331_v59  ;;  %1315 = vst.msk [vmem:[#allocation5 + $0x78] sm:$0xff] %vm254_vm0, %v1299_v55 }
 0x34f   :  { %v1820_v47 = vpop.eup %1819  ;;  %1441 = vst.msk [vmem:[%s2942_s3 + $0x50] sm:$0xff] %vm254_vm0, %v1425_v51  ;;  %v1396_v28 = vadd.f32 %v1378_v0, %v1332_v27 }
 0x350   :  { %v1822_v16 = vpop.eup %1821  ;;  %v1380_v6 = vmul.f32 0.6931472, %v1820_v47  ;;  %1442 = vst.msk [vmem:[%s2942_s3 + $0x58] sm:$0xff] %vm254_vm0, %v1426_v37  ;;  %v1411_v63 = vld [vmem:[#allocation5 + $0x60] sm:$0xff] }
 0x351   :  { %v1382_v44 = vmul.f32 0.6931472, %v1822_v16  ;;  %v1412_v1 = vld [vmem:[#allocation5 + $0x68] sm:$0xff]  ;;  %v1427_v57 = vsub.f32 %v1395_v56, %v1411_v63 }
 0x352   :  { %v1428_v14 = vsub.f32 %v1396_v28, %v1412_v1  ;;  %v1397_v7 = vadd.f32 %v1380_v6, %v1333_v15 }
 0x353   :  { %1443 = vst.msk [vmem:[%s2942_s3 + $0x60] sm:$0xff] %vm254_vm0, %v1427_v57  ;;  %v1398_v10 = vadd.f32 %v1382_v44, %v1334_v25 }
 0x354   :  { %1444 = vst.msk [vmem:[%s2942_s3 + $0x68] sm:$0xff] %vm254_vm0, %v1428_v14  ;;  %v1413_v8 = vld [vmem:[#allocation5 + $0x70] sm:$0xff] }
 0x355   :  { %v1414_v13 = vld [vmem:[#allocation5 + $0x78] sm:$0xff]  ;;  %v1429_v21 = vsub.f32 %v1397_v7, %v1413_v8 }
 0x356   :  { %v1430_v22 = vsub.f32 %v1398_v10, %v1414_v13 }
 0x357   :  { %1445 = vst.msk [vmem:[%s2942_s3 + $0x70] sm:$0xff] %vm254_vm0, %v1429_v21 }
 0x358   :  { %1446 = vst.msk [vmem:[%s2942_s3 + $0x78] sm:$0xff] %vm254_vm0, %v1430_v22 }
 0x359   :  { %1451 = vsyncpa [#allocation7], 1 }
 0x35a   :  { %1452 = vsyncpa [#allocation9], 1 }

</bundles_post_ra>
